<compile_context>
chip_gen: v7x
topology: tpu7x:2x2x1
jax: 0.10.0
libtpu: 0.0.40
codegen_flags: <defaults>
</compile_context>

<pallas_src>
import functools

import jax
import jax.numpy as jnp
from jax.experimental import pallas as pl
from jax.experimental.pallas import tpu as pltpu

LANE = 128


def _hardswish(x):
    return x * jnp.clip(x + 3.0, 0.0, 6.0) * (1.0 / 6.0)


def _hardsigmoid(x):
    return jnp.clip(x + 3.0, 0.0, 6.0) * (1.0 / 6.0)


def _round_up(v, m):
    return ((v + m - 1) // m) * m


def _bottleneck_kernel(Bt, L, K, P, residual,
                       x_ref, w1_ref, b1_ref, wd_ref, b2_ref,
                       wse1_ref, bse1_ref, wse2_ref, bse2_ref,
                       w3_ref, b3_ref, o_ref):
    M = Bt * L
    Cp = x_ref.shape[-1]
    Ep = w1_ref.shape[-1]
    Cop = w3_ref.shape[-1]
    mxu_dtype = w1_ref.dtype

    # (Bt, L, Cp) -> (M, Cp): flatten batch tile into the matmul M dimension.
    x = x_ref[...].reshape(M, Cp)                                   # f32

    # ---- 1x1 expansion conv (BN scale folded into w1) + bias + hardswish ----
    y = jnp.dot(x.astype(mxu_dtype), w1_ref[...],
                preferred_element_type=jnp.float32)                 # (M, Ep)
    y = _hardswish(y + b1_ref[...])

    # ---- depthwise conv (stride=1, "same" pad); BN scale folded into wd -----
    # Taps are built with sublane rotations (XLU) + boundary masks.  The mask
    # also zeroes the cross-sample rows introduced by rolling the flattened
    # (Bt*L) axis, so no per-sample padded scratch buffer is needed.
    l_idx = jax.lax.broadcasted_iota(jnp.int32, (M, 1), 0)
    if Bt > 1:
        l_idx = l_idx % L                                           # position within sample
    acc = jnp.zeros((M, Ep), jnp.float32)
    for j in range(K):                                              # K is small & static
        yj = y if j == P else pltpu.roll(y, shift=(P - j) % M, axis=0)
        lo, hi = P - j, L + P - j
        if lo > 0 or hi < L:
            valid = ((l_idx >= lo) & (l_idx < hi)).astype(jnp.float32)
            yj = yj * valid                                         # (M,1) lane-broadcast
        acc = acc + yj * wd_ref[j:j + 1, :]
    y = acc + b2_ref[...]

    # ---- squeeze-and-excite attention ---------------------------------------
    se = jnp.sum(y.reshape(Bt, L, Ep), axis=1) * (1.0 / L)          # (Bt, Ep)
    z = jnp.dot(se, wse1_ref[...], preferred_element_type=jnp.float32)
    z = jnp.maximum(z + bse1_ref[...], 0.0)                         # (Bt, Erp)
    a = jnp.dot(z, wse2_ref[...], preferred_element_type=jnp.float32)
    a = _hardsigmoid(a + bse2_ref[...])                             # (Bt, Ep)
    att = jnp.broadcast_to(a[:, None, :], (Bt, L, Ep)).reshape(M, Ep)
    y = _hardswish(y * att)

    # ---- 1x1 projection conv (BN scale folded into w3) + bias (+ residual) --
    out = jnp.dot(y.astype(mxu_dtype), w3_ref[...],
                  preferred_element_type=jnp.float32)               # (M, Cop)
    out = out + b3_ref[...]
    if residual:
        out = out + x                                               # exact f32 residual
    o_ref[...] = out.reshape(Bt, L, Cop)                            # lane-dense store


def prepare_params(params, mxu_dtype=jnp.bfloat16):
    """Host-side, one-off: fold eval-mode BN into the conv weights, zero-pad
    channel dims to the 128-lane width, cast MXU operands to bf16.

    Zero padding is exact: padded y channels stay identically 0 through
    hardswish / depthwise / bias, and the padded attention channels
    (hardsigmoid(0)=0.5) only ever multiply those zeros."""
    Cin, E = params["w1"].shape
    Er = params["wse1"].shape[1]
    Cout = params["w3"].shape[1]
    K = params["wd"].shape[0]
    Cp, Ep, Erp, Cop = (_round_up(d, LANE) for d in (Cin, E, Er, Cout))
    # NOTE: with real E=16 padding beyond 128 is pure zero-compute; pad to 256
    # instead when the real channel counts are large (v6e/v7x 2x256 MXU).

    def pad2(a, rows, cols):
        return jnp.pad(a, ((0, rows - a.shape[0]), (0, cols - a.shape[1])))

    prepared = {
        "w1": pad2(params["w1"] * params["s1"], Cp, Ep).astype(mxu_dtype),
        "b1": pad2(params["b1"], 1, Ep),
        "wd": pad2(params["wd"] * params["s2"], K, Ep),      # elementwise -> keep f32
        "b2": pad2(params["b2"], 1, Ep),
        "wse1": pad2(params["wse1"], Ep, Erp),
        "bse1": pad2(params["bse1"], 1, Erp),
        "wse2": pad2(params["wse2"], Erp, Ep),
        "bse2": pad2(params["bse2"], 1, Ep),
        "w3": pad2(params["w3"] * params["s3"], Ep, Cop).astype(mxu_dtype),
        "b3": pad2(params["b3"], 1, Cop),
    }
    return prepared, (Cp, Ep, Erp, Cop)


def bottleneck_forward(x_ncl, params, *, kernel_size, stride):
    assert stride == 1, "only stride=1 implemented"   # TODO(synk): stride > 1
    N, Cin, L = x_ncl.shape
    Cout = params["w3"].shape[1]
    P = (kernel_size - 1) // 2
    residual = (stride == 1 and Cin == Cout)

    prepared, (Cp, Ep, Erp, Cop) = prepare_params(params)

    # Batch-tile size: flatten Bt samples into the matmul M dimension so that
    # Bt*L >= ~256 rows (full MXU height, amortised per-step overhead).
    if L % 8 == 0:
        bt = max(1, min(N, -(-256 // L)))
    else:
        bt = 1          # keep the (Bt,L) <-> (Bt*L) reshapes layout-preserving
    n_pad = _round_up(N, bt)

    # Input prep (single fused XLA pass): NCL -> NLC, zero-pad channels to the
    # lane width and batch to a multiple of Bt.  x stays f32 so the residual
    # and output are exact; MXU operands are cast to bf16 inside the kernel.
    x_nlc = jnp.transpose(x_ncl.astype(jnp.float32), (0, 2, 1))
    x_nlc = jnp.pad(x_nlc, ((0, n_pad - N), (0, 0), (0, Cp - Cin)))

    kernel = functools.partial(_bottleneck_kernel, bt, L, kernel_size, P, residual)

    weight_order = ["w1", "b1", "wd", "b2",
                    "wse1", "bse1", "wse2", "bse2", "w3", "b3"]
    weight_args = [prepared[k] for k in weight_order]
    weight_specs = [pl.BlockSpec(a.shape, lambda n, nd=a.ndim: (0,) * nd)
                    for a in weight_args]

    # Per-step VMEM: double-buffered (Bt,L,Cp) f32 in + (Bt,L,Cop) f32 out +
    # resident (mostly bf16) weights + a few (Bt*L,Ep) f32 temporaries -- a
    # couple of MiB here, well inside v7x's 64 MiB physical VMEM and the
    # 32 MiB limit requested below (also raises v5e's 16 MiB scoped default).
    out_padded = pl.pallas_call(
        kernel,
        out_shape=jax.ShapeDtypeStruct((n_pad, L, Cop), jnp.float32),
        grid=(n_pad // bt,),
        in_specs=[pl.BlockSpec((bt, L, Cp), lambda n: (n, 0, 0))] + weight_specs,
        out_specs=pl.BlockSpec((bt, L, Cop), lambda n: (n, 0, 0)),
        compiler_params=pltpu.CompilerParams(
            dimension_semantics=("parallel",),   # v7x: shard batch tiles across both TCs
            vmem_limit_bytes=32 * 1024 * 1024,
        ),
    )(x_nlc, *weight_args)

    # One slice + transpose back to NCL.  A downstream consumer would take the
    # lane-dense NLC output directly and skip this pass entirely.
    return jnp.transpose(out_padded[:N, :, :Cout], (0, 2, 1))


def reference_forward(x_ncl, params, *, kernel_size, stride):
    """Pure-JAX f32 mirror of the PyTorch forward (eval-mode BN)."""
    assert stride == 1
    x = jnp.transpose(x_ncl, (0, 2, 1)).astype(jnp.float32)           # (N, L, Cin)
    N, L, Cin = x.shape
    P = (kernel_size - 1) // 2
    Cout = params["w3"].shape[1]
    residual = (stride == 1 and Cin == Cout)

    y = jnp.einsum("nlc,ce->nle", x, params["w1"])
    y = _hardswish(y * params["s1"] + params["b1"])
    yp = jnp.pad(y, ((0, 0), (P, P), (0, 0)))
    acc = jnp.zeros_like(y)
    for j in range(kernel_size):
        acc = acc + yp[:, j:j + L, :] * params["wd"][j:j + 1, :]
    y = acc * params["s2"] + params["b2"]
    se = jnp.mean(y, axis=1, keepdims=True)
    z = jnp.maximum(jnp.einsum("nle,er->nlr", se, params["wse1"]) + params["bse1"], 0.0)
    a = _hardsigmoid(jnp.einsum("nlr,re->nle", z, params["wse2"]) + params["bse2"])
    y = _hardswish(y * a)
    out = jnp.einsum("nle,eo->nlo", y, params["w3"]) * params["s3"] + params["b3"]
    if residual:
        out = out + x
    return jnp.transpose(out, (0, 2, 1))


def make_params(key, Cin, Cout, E, K):
    """Deterministic synthetic parameters (eval-mode BN as scale/shift)."""
    Er = max(E // 4, 1)
    ks = jax.random.split(key, 16)

    def bn_fold(kg, kb, km, kv, C, eps=1e-5):
        gamma = 1.0 + 0.1 * jax.random.normal(kg, (C,), jnp.float32)
        beta = 0.1 * jax.random.normal(kb, (C,), jnp.float32)
        mean = 0.1 * jax.random.normal(km, (C,), jnp.float32)
        var = jnp.abs(jax.random.normal(kv, (C,), jnp.float32)) + 0.5
        scale = gamma / jnp.sqrt(var + eps)
        shift = beta - mean * scale
        return scale[None, :], shift[None, :]

    s1, b1 = bn_fold(ks[0], ks[1], ks[2], ks[3], E)
    s2, b2 = bn_fold(ks[4], ks[5], ks[6], ks[7], E)
    s3, b3 = bn_fold(ks[8], ks[9], ks[10], ks[11], Cout)

    params = {
        # conv weights pre-transposed for (M, C) @ (Cin, Cout) matmuls
        "w1": 0.2 * jax.random.normal(ks[12], (Cin, E), jnp.float32),    # torch (E, Cin, 1)
        "wd": 0.2 * jax.random.normal(ks[13], (K, E), jnp.float32),      # torch (E, 1, K)
        "w3": 0.2 * jax.random.normal(ks[14], (E, Cout), jnp.float32),   # torch (Cout, E, 1)
        "s1": s1, "b1": b1, "s2": s2, "b2": b2, "s3": s3, "b3": b3,
        # squeeze-and-excite (standard MobileNetV3 attention choice)
        "wse1": 0.2 * jax.random.normal(jax.random.fold_in(ks[15], 0), (E, Er), jnp.float32),
        "bse1": jnp.zeros((1, Er), jnp.float32),
        "wse2": 0.2 * jax.random.normal(jax.random.fold_in(ks[15], 1), (Er, E), jnp.float32),
        "bse2": jnp.zeros((1, E), jnp.float32),
    }
    return params


if __name__ == "__main__":
    # Conv1d input is (N, C, L).  Small, but large enough to exercise batch
    # fusion: Bt = 4 samples per grid step -> M = Bt*L = 256 rows, grid of 2.
    N, Cin, Cout, L = 8, 8, 8, 64
    kernel_size, stride, expansion = 3, 1, 16

    key = jax.random.PRNGKey(0)
    k_x, k_p = jax.random.split(key)
    x = jax.random.normal(k_x, (N, Cin, L), jnp.float32)
    params = make_params(k_p, Cin, Cout, expansion, kernel_size)

    out = bottleneck_forward(x, params, kernel_size=kernel_size, stride=stride)
    out = jax.block_until_ready(out)

    ref = reference_forward(x, params, kernel_size=kernel_size, stride=stride)
    assert out.shape == (N, Cout, L)
    max_err = float(jnp.max(jnp.abs(out - ref)))
    # bf16 MXU operands -> tolerance sized for bf16 rounding of the matmuls.
    assert jnp.allclose(out, ref, atol=5e-2, rtol=5e-2), f"max abs err {max_err}"
    print("KERNEL_OK")
</pallas_src>

<mosaic_0001>
module attributes {stable_mosaic.version = 11 : i64} {
  func.func @_bottleneck_kernel(%arg0: i32, %arg1: memref<4x64x128xf32, #tpu.memory_space<vmem>>, %arg2: memref<128x128xbf16, #tpu.memory_space<vmem>>, %arg3: memref<1x128xf32, #tpu.memory_space<vmem>>, %arg4: memref<3x128xf32, #tpu.memory_space<vmem>>, %arg5: memref<1x128xf32, #tpu.memory_space<vmem>>, %arg6: memref<128x128xf32, #tpu.memory_space<vmem>>, %arg7: memref<1x128xf32, #tpu.memory_space<vmem>>, %arg8: memref<128x128xf32, #tpu.memory_space<vmem>>, %arg9: memref<1x128xf32, #tpu.memory_space<vmem>>, %arg10: memref<128x128xbf16, #tpu.memory_space<vmem>>, %arg11: memref<1x128xf32, #tpu.memory_space<vmem>>, %arg12: memref<4x64x128xf32, #tpu.memory_space<vmem>>) attributes {dimension_semantics = [#tpu.dimension_semantics<parallel>], iteration_bounds = array<i64: 2>, scalar_prefetch = 0 : i64, scratch_operands = 0 : i64, tpu.core_type = #tpu.core_type<tc>, window_params = [{transform_indices = @transform_0, window_bounds = array<i64: 4, 64, 128>}, {pipeline_mode = #tpu.pipeline_mode<synchronous>, transform_indices = @transform_1, window_bounds = array<i64: 128, 128>}, {pipeline_mode = #tpu.pipeline_mode<synchronous>, transform_indices = @transform_2, window_bounds = array<i64: 1, 128>}, {pipeline_mode = #tpu.pipeline_mode<synchronous>, transform_indices = @transform_3, window_bounds = array<i64: 3, 128>}, {pipeline_mode = #tpu.pipeline_mode<synchronous>, transform_indices = @transform_4, window_bounds = array<i64: 1, 128>}, {pipeline_mode = #tpu.pipeline_mode<synchronous>, transform_indices = @transform_5, window_bounds = array<i64: 128, 128>}, {pipeline_mode = #tpu.pipeline_mode<synchronous>, transform_indices = @transform_6, window_bounds = array<i64: 1, 128>}, {pipeline_mode = #tpu.pipeline_mode<synchronous>, transform_indices = @transform_7, window_bounds = array<i64: 128, 128>}, {pipeline_mode = #tpu.pipeline_mode<synchronous>, transform_indices = @transform_8, window_bounds = array<i64: 1, 128>}, {pipeline_mode = #tpu.pipeline_mode<synchronous>, transform_indices = @transform_9, window_bounds = array<i64: 128, 128>}, {pipeline_mode = #tpu.pipeline_mode<synchronous>, transform_indices = @transform_10, window_bounds = array<i64: 1, 128>}, {transform_indices = @transform_11, window_bounds = array<i64: 4, 64, 128>}]} {
    %c0 = arith.constant 0 : index
    %c0_0 = arith.constant 0 : index
    %c0_1 = arith.constant 0 : index
    %0 = vector.load %arg1[%c0, %c0_0, %c0_1] : memref<4x64x128xf32, #tpu.memory_space<vmem>>, vector<4x64x128xf32>
    %1 = vector.shape_cast %0 : vector<4x64x128xf32> to vector<256x128xf32>
    %2 = arith.truncf %1 : vector<256x128xf32> to vector<256x128xbf16>
    %c0_2 = arith.constant 0 : index
    %c0_3 = arith.constant 0 : index
    %3 = vector.load %arg2[%c0_2, %c0_3] : memref<128x128xbf16, #tpu.memory_space<vmem>>, vector<128x128xbf16>
    %cst = arith.constant dense<0.000000e+00> : vector<256x128xf32>
    %4 = tpu.matmul %2, %3, %cst {dimension_numbers = #tpu.dot_dimension_numbers<[1], [0], [0], [1], [0, 0, 1, 1], [], []>} : vector<256x128xbf16>, vector<128x128xbf16>, vector<256x128xf32> -> vector<256x128xf32>
    %c0_4 = arith.constant 0 : index
    %c0_5 = arith.constant 0 : index
    %5 = vector.load %arg3[%c0_4, %c0_5] : memref<1x128xf32, #tpu.memory_space<vmem>>, vector<1x128xf32>
    %6 = vector.broadcast %5 : vector<1x128xf32> to vector<256x128xf32>
    %7 = arith.addf %4, %6 : vector<256x128xf32>
    %cst_6 = arith.constant 3.000000e+00 : f32
    %8 = vector.broadcast %cst_6 : f32 to vector<256x128xf32>
    %9 = arith.addf %7, %8 : vector<256x128xf32>
    %cst_7 = arith.constant 0.000000e+00 : f32
    %cst_8 = arith.constant 6.000000e+00 : f32
    %10 = vector.broadcast %cst_7 : f32 to vector<256x128xf32>
    %11 = arith.maximumf %10, %9 : vector<256x128xf32>
    %12 = vector.broadcast %cst_8 : f32 to vector<256x128xf32>
    %13 = arith.minimumf %12, %11 : vector<256x128xf32>
    %14 = arith.mulf %7, %13 : vector<256x128xf32>
    %cst_9 = arith.constant 0.166666672 : f32
    %15 = vector.broadcast %cst_9 : f32 to vector<256x128xf32>
    %16 = arith.mulf %14, %15 : vector<256x128xf32>
    %17 = tpu.iota {dimensions = array<i32: 0>} : vector<256x1xi32>
    %c64_i32 = arith.constant 64 : i32
    %c0_i32 = arith.constant 0 : i32
    %18 = arith.cmpi eq, %c64_i32, %c0_i32 : i32
    %c1_i32 = arith.constant 1 : i32
    %19 = arith.select %18, %c1_i32, %c64_i32 : i32
    %20 = vector.broadcast %19 : i32 to vector<256x1xi32>
    %21 = arith.remsi %17, %20 : vector<256x1xi32>
    %c0_i32_10 = arith.constant 0 : i32
    %22 = vector.broadcast %c0_i32_10 : i32 to vector<256x1xi32>
    %23 = arith.cmpi ne, %21, %22 : vector<256x1xi32>
    %c0_i32_11 = arith.constant 0 : i32
    %24 = vector.broadcast %c0_i32_11 : i32 to vector<256x1xi32>
    %25 = arith.cmpi slt, %21, %24 : vector<256x1xi32>
    %c0_i32_12 = arith.constant 0 : i32
    %26 = arith.cmpi slt, %19, %c0_i32_12 : i32
    %27 = vector.broadcast %26 : i1 to vector<256x1xi1>
    %28 = vector.broadcast %27 : vector<256x1xi1> to vector<256x1xi1>
    %29 = arith.xori %25, %28 : vector<256x1xi1>
    %30 = arith.andi %29, %23 : vector<256x1xi1>
    %31 = vector.broadcast %19 : i32 to vector<256x1xi32>
    %32 = arith.addi %21, %31 : vector<256x1xi32>
    %33 = arith.select %30, %32, %21 : vector<256x1xi1>, vector<256x1xi32>
    %cst_13 = arith.constant 0.000000e+00 : f32
    %34 = vector.broadcast %cst_13 : f32 to vector<256x128xf32>
    %c1_i32_14 = arith.constant 1 : i32
    %35 = tpu.dynamic_rotate %16 by %c1_i32_14 dim 0 : vector<256x128xf32>, i32 -> vector<256x128xf32>
    %c1_i32_15 = arith.constant 1 : i32
    %36 = vector.broadcast %c1_i32_15 : i32 to vector<256x1xi32>
    %37 = arith.cmpi sge, %33, %36 : vector<256x1xi32>
    %c65_i32 = arith.constant 65 : i32
    %38 = vector.broadcast %c65_i32 : i32 to vector<256x1xi32>
    %39 = arith.cmpi slt, %33, %38 : vector<256x1xi32>
    %40 = arith.andi %37, %39 : vector<256x1xi1>
    %41 = arith.extui %40 : vector<256x1xi1> to vector<256x1xi32>
    %42 = arith.sitofp %41 : vector<256x1xi32> to vector<256x1xf32>
    %43 = vector.broadcast %42 : vector<256x1xf32> to vector<256x128xf32>
    %44 = arith.mulf %35, %43 : vector<256x128xf32>
    %c0_16 = arith.constant 0 : index
    %c0_17 = arith.constant 0 : index
    %45 = vector.load %arg4[%c0_16, %c0_17] : memref<3x128xf32, #tpu.memory_space<vmem>>, vector<1x128xf32>
    %46 = vector.broadcast %45 : vector<1x128xf32> to vector<256x128xf32>
    %47 = arith.mulf %44, %46 : vector<256x128xf32>
    %48 = arith.addf %34, %47 : vector<256x128xf32>
    %c1 = arith.constant 1 : index
    %c0_18 = arith.constant 0 : index
    %49 = vector.load %arg4[%c1, %c0_18] : memref<3x128xf32, #tpu.memory_space<vmem>>, vector<1x128xf32>
    %50 = vector.broadcast %49 : vector<1x128xf32> to vector<256x128xf32>
    %51 = arith.mulf %16, %50 : vector<256x128xf32>
    %52 = arith.addf %48, %51 : vector<256x128xf32>
    %c255_i32 = arith.constant 255 : i32
    %53 = tpu.dynamic_rotate %16 by %c255_i32 dim 0 : vector<256x128xf32>, i32 -> vector<256x128xf32>
    %c-1_i32 = arith.constant -1 : i32
    %54 = vector.broadcast %c-1_i32 : i32 to vector<256x1xi32>
    %55 = arith.cmpi sge, %33, %54 : vector<256x1xi32>
    %c63_i32 = arith.constant 63 : i32
    %56 = vector.broadcast %c63_i32 : i32 to vector<256x1xi32>
    %57 = arith.cmpi slt, %33, %56 : vector<256x1xi32>
    %58 = arith.andi %55, %57 : vector<256x1xi1>
    %59 = arith.extui %58 : vector<256x1xi1> to vector<256x1xi32>
    %60 = arith.sitofp %59 : vector<256x1xi32> to vector<256x1xf32>
    %61 = vector.broadcast %60 : vector<256x1xf32> to vector<256x128xf32>
    %62 = arith.mulf %53, %61 : vector<256x128xf32>
    %c2 = arith.constant 2 : index
    %c0_19 = arith.constant 0 : index
    %63 = vector.load %arg4[%c2, %c0_19] : memref<3x128xf32, #tpu.memory_space<vmem>>, vector<1x128xf32>
    %64 = vector.broadcast %63 : vector<1x128xf32> to vector<256x128xf32>
    %65 = arith.mulf %62, %64 : vector<256x128xf32>
    %66 = arith.addf %52, %65 : vector<256x128xf32>
    %c0_20 = arith.constant 0 : index
    %c0_21 = arith.constant 0 : index
    %67 = vector.load %arg5[%c0_20, %c0_21] : memref<1x128xf32, #tpu.memory_space<vmem>>, vector<1x128xf32>
    %68 = vector.broadcast %67 : vector<1x128xf32> to vector<256x128xf32>
    %69 = arith.addf %66, %68 : vector<256x128xf32>
    %70 = vector.shape_cast %69 : vector<256x128xf32> to vector<4x64x128xf32>
    %cst_22 = arith.constant dense<0.000000e+00> : vector<4x128xf32>
    %71 = vector.multi_reduction <add>, %70, %cst_22 [1] : vector<4x64x128xf32> to vector<4x128xf32>
    %cst_23 = arith.constant 1.562500e-02 : f32
    %72 = vector.broadcast %cst_23 : f32 to vector<4x128xf32>
    %73 = arith.mulf %71, %72 : vector<4x128xf32>
    %c0_24 = arith.constant 0 : index
    %c0_25 = arith.constant 0 : index
    %74 = vector.load %arg6[%c0_24, %c0_25] : memref<128x128xf32, #tpu.memory_space<vmem>>, vector<128x128xf32>
    %cst_26 = arith.constant dense<0.000000e+00> : vector<4x128xf32>
    %75 = tpu.matmul %73, %74, %cst_26 {dimension_numbers = #tpu.dot_dimension_numbers<[1], [0], [0], [1], [0, 0, 1, 1], [], []>} : vector<4x128xf32>, vector<128x128xf32>, vector<4x128xf32> -> vector<4x128xf32>
    %c0_27 = arith.constant 0 : index
    %c0_28 = arith.constant 0 : index
    %76 = vector.load %arg7[%c0_27, %c0_28] : memref<1x128xf32, #tpu.memory_space<vmem>>, vector<1x128xf32>
    %77 = vector.broadcast %76 : vector<1x128xf32> to vector<4x128xf32>
    %78 = arith.addf %75, %77 : vector<4x128xf32>
    %cst_29 = arith.constant 0.000000e+00 : f32
    %79 = vector.broadcast %cst_29 : f32 to vector<4x128xf32>
    %80 = arith.maximumf %78, %79 : vector<4x128xf32>
    %c0_30 = arith.constant 0 : index
    %c0_31 = arith.constant 0 : index
    %81 = vector.load %arg8[%c0_30, %c0_31] : memref<128x128xf32, #tpu.memory_space<vmem>>, vector<128x128xf32>
    %cst_32 = arith.constant dense<0.000000e+00> : vector<4x128xf32>
    %82 = tpu.matmul %80, %81, %cst_32 {dimension_numbers = #tpu.dot_dimension_numbers<[1], [0], [0], [1], [0, 0, 1, 1], [], []>} : vector<4x128xf32>, vector<128x128xf32>, vector<4x128xf32> -> vector<4x128xf32>
    %c0_33 = arith.constant 0 : index
    %c0_34 = arith.constant 0 : index
    %83 = vector.load %arg9[%c0_33, %c0_34] : memref<1x128xf32, #tpu.memory_space<vmem>>, vector<1x128xf32>
    %84 = vector.broadcast %83 : vector<1x128xf32> to vector<4x128xf32>
    %85 = arith.addf %82, %84 : vector<4x128xf32>
    %cst_35 = arith.constant 3.000000e+00 : f32
    %86 = vector.broadcast %cst_35 : f32 to vector<4x128xf32>
    %87 = arith.addf %85, %86 : vector<4x128xf32>
    %cst_36 = arith.constant 0.000000e+00 : f32
    %cst_37 = arith.constant 6.000000e+00 : f32
    %88 = vector.broadcast %cst_36 : f32 to vector<4x128xf32>
    %89 = arith.maximumf %88, %87 : vector<4x128xf32>
    %90 = vector.broadcast %cst_37 : f32 to vector<4x128xf32>
    %91 = arith.minimumf %90, %89 : vector<4x128xf32>
    %cst_38 = arith.constant 0.166666672 : f32
    %92 = vector.broadcast %cst_38 : f32 to vector<4x128xf32>
    %93 = arith.mulf %91, %92 : vector<4x128xf32>
    %94 = vector.shape_cast %93 : vector<4x128xf32> to vector<4x1x128xf32>
    %95 = vector.shape_cast %94 : vector<4x1x128xf32> to vector<4x1x128xf32>
    %96 = vector.broadcast %95 : vector<4x1x128xf32> to vector<4x64x128xf32>
    %97 = vector.shape_cast %96 : vector<4x64x128xf32> to vector<256x128xf32>
    %98 = arith.mulf %69, %97 : vector<256x128xf32>
    %cst_39 = arith.constant 3.000000e+00 : f32
    %99 = vector.broadcast %cst_39 : f32 to vector<256x128xf32>
    %100 = arith.addf %98, %99 : vector<256x128xf32>
    %cst_40 = arith.constant 0.000000e+00 : f32
    %cst_41 = arith.constant 6.000000e+00 : f32
    %101 = vector.broadcast %cst_40 : f32 to vector<256x128xf32>
    %102 = arith.maximumf %101, %100 : vector<256x128xf32>
    %103 = vector.broadcast %cst_41 : f32 to vector<256x128xf32>
    %104 = arith.minimumf %103, %102 : vector<256x128xf32>
    %105 = arith.mulf %98, %104 : vector<256x128xf32>
    %cst_42 = arith.constant 0.166666672 : f32
    %106 = vector.broadcast %cst_42 : f32 to vector<256x128xf32>
    %107 = arith.mulf %105, %106 : vector<256x128xf32>
    %108 = arith.truncf %107 : vector<256x128xf32> to vector<256x128xbf16>
    %c0_43 = arith.constant 0 : index
    %c0_44 = arith.constant 0 : index
    %109 = vector.load %arg10[%c0_43, %c0_44] : memref<128x128xbf16, #tpu.memory_space<vmem>>, vector<128x128xbf16>
    %cst_45 = arith.constant dense<0.000000e+00> : vector<256x128xf32>
    %110 = tpu.matmul %108, %109, %cst_45 {dimension_numbers = #tpu.dot_dimension_numbers<[1], [0], [0], [1], [0, 0, 1, 1], [], []>} : vector<256x128xbf16>, vector<128x128xbf16>, vector<256x128xf32> -> vector<256x128xf32>
    %c0_46 = arith.constant 0 : index
    %c0_47 = arith.constant 0 : index
    %111 = vector.load %arg11[%c0_46, %c0_47] : memref<1x128xf32, #tpu.memory_space<vmem>>, vector<1x128xf32>
    %112 = vector.broadcast %111 : vector<1x128xf32> to vector<256x128xf32>
    %113 = arith.addf %110, %112 : vector<256x128xf32>
    %114 = arith.addf %113, %1 : vector<256x128xf32>
    %115 = vector.shape_cast %114 : vector<256x128xf32> to vector<4x64x128xf32>
    %c0_48 = arith.constant 0 : index
    %c0_49 = arith.constant 0 : index
    %c0_50 = arith.constant 0 : index
    %116 = vector.load %arg12[%c0_48, %c0_49, %c0_50] : memref<4x64x128xf32, #tpu.memory_space<vmem>>, vector<4x64x128xf32>
    tpu.vector_store %arg12[%c0_48, %c0_49, %c0_50], %115 {strides = array<i32>} : memref<4x64x128xf32, #tpu.memory_space<vmem>>, vector<4x64x128xf32>,
    return
  }
  func.func @transform_0(%arg0: i32) -> (i32, i32, i32) {
    %c0_i32 = arith.constant 0 : i32
    %c0_i32_0 = arith.constant 0 : i32
    %c0_i32_1 = arith.constant 0 : i32
    return %arg0, %c0_i32, %c0_i32_0 : i32, i32, i32
  }
  func.func @transform_1(%arg0: i32) -> (i32, i32) {
    %c0_i32 = arith.constant 0 : i32
    %c0_i32_0 = arith.constant 0 : i32
    %c0_i32_1 = arith.constant 0 : i32
    return %c0_i32, %c0_i32_0 : i32, i32
  }
  func.func @transform_2(%arg0: i32) -> (i32, i32) {
    %c0_i32 = arith.constant 0 : i32
    %c0_i32_0 = arith.constant 0 : i32
    %c0_i32_1 = arith.constant 0 : i32
    return %c0_i32, %c0_i32_0 : i32, i32
  }
  func.func @transform_3(%arg0: i32) -> (i32, i32) {
    %c0_i32 = arith.constant 0 : i32
    %c0_i32_0 = arith.constant 0 : i32
    %c0_i32_1 = arith.constant 0 : i32
    return %c0_i32, %c0_i32_0 : i32, i32
  }
  func.func @transform_4(%arg0: i32) -> (i32, i32) {
    %c0_i32 = arith.constant 0 : i32
    %c0_i32_0 = arith.constant 0 : i32
    %c0_i32_1 = arith.constant 0 : i32
    return %c0_i32, %c0_i32_0 : i32, i32
  }
  func.func @transform_5(%arg0: i32) -> (i32, i32) {
    %c0_i32 = arith.constant 0 : i32
    %c0_i32_0 = arith.constant 0 : i32
    %c0_i32_1 = arith.constant 0 : i32
    return %c0_i32, %c0_i32_0 : i32, i32
  }
  func.func @transform_6(%arg0: i32) -> (i32, i32) {
    %c0_i32 = arith.constant 0 : i32
    %c0_i32_0 = arith.constant 0 : i32
    %c0_i32_1 = arith.constant 0 : i32
    return %c0_i32, %c0_i32_0 : i32, i32
  }
  func.func @transform_7(%arg0: i32) -> (i32, i32) {
    %c0_i32 = arith.constant 0 : i32
    %c0_i32_0 = arith.constant 0 : i32
    %c0_i32_1 = arith.constant 0 : i32
    return %c0_i32, %c0_i32_0 : i32, i32
  }
  func.func @transform_8(%arg0: i32) -> (i32, i32) {
    %c0_i32 = arith.constant 0 : i32
    %c0_i32_0 = arith.constant 0 : i32
    %c0_i32_1 = arith.constant 0 : i32
    return %c0_i32, %c0_i32_0 : i32, i32
  }
  func.func @transform_9(%arg0: i32) -> (i32, i32) {
    %c0_i32 = arith.constant 0 : i32
    %c0_i32_0 = arith.constant 0 : i32
    %c0_i32_1 = arith.constant 0 : i32
    return %c0_i32, %c0_i32_0 : i32, i32
  }
  func.func @transform_10(%arg0: i32) -> (i32, i32) {
    %c0_i32 = arith.constant 0 : i32
    %c0_i32_0 = arith.constant 0 : i32
    %c0_i32_1 = arith.constant 0 : i32
    return %c0_i32, %c0_i32_0 : i32, i32
  }
  func.func @transform_11(%arg0: i32) -> (i32, i32, i32) {
    %c0_i32 = arith.constant 0 : i32
    %c0_i32_0 = arith.constant 0 : i32
    %c0_i32_1 = arith.constant 0 : i32
    return %arg0, %c0_i32, %c0_i32_0 : i32, i32, i32
  }
}

</mosaic_0001>

<bundles_post_ra>
// kernel: tpu_custom_call.1
= control target key start
LH: loop header
LB: loop body
LE: loop exit
PB: predicated region body
PF: predicated region fallthrough
CT: control target
= control target key end

     0   :  { %s5291_s0 = inlined_call_operand.hbm [shape: f32[8,64,128], index: 0, kind: input, shape index: {}]   ;;  %s5292_s1 = inlined_call_operand.hbm [shape: bf16[128,128], index: 1, kind: input, shape index: {}]   ;;  %s5293_s2 = inlined_call_operand.vmem [shape: f32[1,128], index: 2, kind: input, shape index: {}]   ;;  %s5294_s3 = inlined_call_operand.vmem [shape: f32[3,128], index: 3, kind: input, shape index: {}]   ;;  %s5295_s4 = inlined_call_operand.vmem [shape: f32[1,128], index: 4, kind: input, shape index: {}]   ;;  %s5296_s5 = inlined_call_operand.hbm [shape: f32[128,128], index: 5, kind: input, shape index: {}]   ;;  %s5297_s6 = inlined_call_operand.vmem [shape: f32[1,128], index: 6, kind: input, shape index: {}]   ;;  %s5298_s7 = inlined_call_operand.hbm [shape: f32[128,128], index: 7, kind: input, shape index: {}]   ;;  %s5299_s8 = inlined_call_operand.vmem [shape: f32[1,128], index: 8, kind: input, shape index: {}]   ;;  %s5300_s9 = inlined_call_operand.hbm [shape: bf16[128,128], index: 9, kind: input, shape index: {}]   ;;  %s5301_s10 = inlined_call_operand.vmem [shape: f32[1,128], index: 10, kind: input, shape index: {}]   ;;  %s5302_s11 = inlined_call_operand.hbm [shape: f32[8,64,128], index: 11, kind: output, shape index: {}]  }
   0x1   :  { %5341 = sst [smem:[#allocation29_spill]] %s5297_s6 }
   0x2   :  { %5342 = sst [smem:[#allocation30_spill]] %s5299_s8 }
   0x3   :  { %5343 = sst [smem:[#allocation31_spill]] %s5301_s10 }
   0x4   :  { %5344 = sst [smem:[#allocation32_spill]] %s5302_s11 }
   0x5   :  { %16 = vsyncpa [#allocation3], 0 }
   0x6   :  { %18 = vsyncpa [#allocation3 + $0x1], 0 }
   0x7   :  { %19 = vsyncpa [#allocation6], 0 }
   0x8   :  { %20 = vsyncpa [#allocation9], 0 }
   0x9   :  { %21 = vsyncpa [#allocation4], 0 }
   0xa   :  { %23 = vsyncpa [#allocation4 + $0x1], 0  ;;  %s3829_s17 = smov 0   ;;  %s3831_s18 = smov 0  }
   0xb   :  { %s3833_s19 = smov 0   ;;  %s3835_s20 = smov 0  }
   0xc LB: > { %5345 = sst [smem:[#allocation16_spill]] %s3739_s17  ;;  %s3850_s21 = sadd.s32 4294967295, %s3751_s20   ;;  %s3751_s20 = sphi %s3835_s20, %s5439_s20   ;;  %s3747_s19 = sphi %s3833_s19, %s5438_s19   ;;  %s3743_s18 = sphi %s3831_s18, %s5437_s18   ;;  %s3739_s17 = sphi %s3829_s17, %s5436_s17  }
   0xd   : > { %s3017_s22 = sadd.s32 4294967294, %s3751_s20   ;;  %p49_p0 = scmp.ne.s32.totalorder %s3743_s18, %s3739_s17 }
   0xe   : > { %p5304_p1 = scmp.eq.s32.totalorder %s3850_s21, 0  ;;  %p289_p3 = scmp.eq.s32.totalorder %s3017_s22, 1 }
   0xf   : > { %p3018_p5 = scmp.ge.s32.totalorder %s3751_s20, 1  ;;  %p296_p7 = scmp.lt.s32.totalorder %s3751_s20, 3 }
  0x10   : > { %p3859_p4 = por %p5304_p1, %p49_p0  ;;  %p3864_p6 = por %p289_p3, %p49_p0 }
  0x11   : > { %p3869_p8 = pnand %p3018_p5, %p296_p7  ;;  %s3753_s26 = smov [#allocation5]  }
  0x12   : > { %s5346_s23 = scalar_select %p3859_p4, 1, 0 }
  0x13   : > { %s5347_s24 = scalar_select %p3864_p6, 1, 0 }
  0x14   : > { %s5349_s25 = scalar_select %p3869_p8, 1, 0 }
  0x15   : > { %5348 = sst [smem:[#allocation17_spill]] %s5347_s24  ;;  %s308_s27 = sshll.u32 %s3753_s26, 4  ;;  %s309_s27 = int_to_ptr.vmem [resolvable:$true] %s308_s27 }
  0x16   : > { %p3409_p9 = pneg %p3869_p8  ;;  %s3754_s29 = smov [#allocation8]  }
  0x17   : > { %s346_s30 = sshll.u32 %s3754_s29, 4  ;;  %s3535_s14 = scalar_lea.hbm %s5292_s1, 1024  ;;  %s347_s30 = int_to_ptr.vmem [resolvable:$true] %s346_s30 }
  0x18   : > { %p3878_p11 = pnand %p3409_p9, %p5304_p1  ;;  %p3536_p12 = scmp.ne.s32.totalorder %s5292_s1, %s3535_s14 }
  0x19   : > { %p3542_p5 = scmp.lt.u32.totalorder %s3535_s14, %s5292_s1 }
  0x1a   : > { %p3890_p13 = pneg %p3878_p11 }
  0x1c   : > { %p3538_p0 = pnand %p3890_p13, %p3536_p12 }
  0x1e   : > { %p3539_p3 = pneg %p3538_p0 }
  0x20   : > { %p3544_p7 = pnand %p3542_p5, %p3539_p3 }
  0x22   : > { %3547 = shalt.err (!%p3544_p7)
}
  0x23   : > { %s3548_s29 = scalar_lea.vmem %s309_s27, 1024  ;;  %p3556_p2 = scmp.lt.s32.totalorder %s309_s27, %s309_s27 }
  0x24   : > { %p3549_p9 = scmp.ne.s32.totalorder %s309_s27, %s3548_s29  ;;  %p3557_p6 = scmp.lt.s32.totalorder %s3548_s29, %s3548_s29 }
  0x26   : > { %p3551_p10 = pnand %p3549_p9, %p3890_p13  ;;  %p3558_p4 = por %p3557_p6, %p3556_p2 }
  0x28   : > { %p3552_p1 = pneg %p3551_p10 }
  0x2a   : > { %p3559_p8 = pnand %p3558_p4, %p3552_p1 }
  0x2c   : > { %3562 = shalt.err (!%p3559_p8)
}
  0x2d   : > { %s5309_s12 = smov 64   ;;  %s3756_s13 = smov 4  }
  0x2e   : > { %3412 = dma.hbm_to_vmem [thread:$0]  (!%p3878_p11), %s5292_s1, 1024, %s309_s27, [#allocation6], %s5309_s12, %s5309_s12, %s3756_s13  }
  0x2f   : > { %s3757_s15 = smov [#allocation7]   ;;  %s3563_s17 = scalar_lea.hbm %s5298_s7, 2048 }
  0x30   : > { %s330_s16 = sshll.u32 %s3757_s15, 4  ;;  %p3564_p1 = scmp.ne.s32.totalorder %s5298_s7, %s3563_s17  ;;  %s331_s16 = int_to_ptr.vmem [resolvable:$true] %s330_s16 }
  0x31   : > { %p3570_p6 = scmp.lt.u32.totalorder %s3563_s17, %s5298_s7 }
  0x32   : > { %p3566_p2 = pnand %p3564_p1, %p3890_p13 }
  0x34   : > { %p3567_p4 = pneg %p3566_p2 }
  0x36   : > { %p3572_p8 = pnand %p3570_p6, %p3567_p4 }
  0x38   : > { %3575 = shalt.err (!%p3572_p8)
}
  0x39   : > { %s3576_s27 = scalar_lea.vmem %s347_s30, 2048  ;;  %p3584_p3 = scmp.lt.s32.totalorder %s347_s30, %s347_s30 }
  0x3a   : > { %p3577_p10 = scmp.ne.s32.totalorder %s347_s30, %s3576_s27  ;;  %p3585_p5 = scmp.lt.s32.totalorder %s3576_s27, %s3576_s27 }
  0x3c   : > { %p3579_p12 = pnand %p3577_p10, %p3890_p13  ;;  %p3586_p7 = por %p3585_p5, %p3584_p3 }
  0x3e   : > { %p3580_p0 = pneg %p3579_p12 }
  0x40   : > { %p3587_p9 = pnand %p3586_p7, %p3580_p0 }
  0x42   : > { %3590 = shalt.err (!%p3587_p9)
}
  0x43   : > { %s3758_s10 = smov 128   ;;  %s3759_s11 = smov 8  }
  0x44   : > { %3418 = dma.hbm_to_vmem [thread:$0]  (!%p3878_p11), %s5298_s7, 2048, %s347_s30, [#allocation9], %s3758_s10, %s3758_s10, %s3759_s11  }
  0x45   : > { %s3591_s14 = scalar_lea.hbm %s5296_s5, 2048 }
  0x46   : > { %p3592_p1 = scmp.ne.s32.totalorder %s5296_s5, %s3591_s14  ;;  %p3598_p6 = scmp.lt.u32.totalorder %s3591_s14, %s5296_s5 }
  0x48   : > { %p3594_p2 = pnand %p3592_p1, %p3890_p13 }
  0x4a   : > { %p3595_p4 = pneg %p3594_p2 }
  0x4c   : > { %p3600_p8 = pnand %p3598_p6, %p3595_p4 }
  0x4e   : > { %3603 = shalt.err (!%p3600_p8)
}
  0x4f   : > { %s3604_s6 = scalar_lea.vmem %s331_s16, 2048  ;;  %p3612_p3 = scmp.lt.s32.totalorder %s331_s16, %s331_s16 }
  0x50   : > { %p3605_p10 = scmp.ne.s32.totalorder %s331_s16, %s3604_s6  ;;  %p3613_p5 = scmp.lt.s32.totalorder %s3604_s6, %s3604_s6 }
  0x52   : > { %p3607_p12 = pnand %p3605_p10, %p3890_p13  ;;  %p3614_p7 = por %p3613_p5, %p3612_p3 }
  0x54   : > { %p3608_p0 = pneg %p3607_p12 }
  0x56   : > { %p3615_p9 = pnand %p3614_p7, %p3608_p0 }
  0x58   : > { %3618 = shalt.err (!%p3615_p9)
}
  0x59   : > { %3415 = dma.hbm_to_vmem [thread:$0]  (!%p3878_p11), %s5296_s5, 2048, %s331_s16, [#allocation6], %s3758_s10, %s3758_s10, %s3759_s11  }
  0x5a   : > { %s3760_s17 = smov [#allocation10]   ;;  %s3619_s26 = scalar_lea.hbm %s5300_s9, 1024 }
  0x5b   : > { %s362_s24 = sshll.u32 %s3760_s17, 4  ;;  %p3620_p1 = scmp.ne.s32.totalorder %s5300_s9, %s3619_s26  ;;  %s363_s24 = int_to_ptr.vmem [resolvable:$true] %s362_s24 }
  0x5c   : > { %p3626_p6 = scmp.lt.u32.totalorder %s3619_s26, %s5300_s9 }
  0x5d   : > { %p3622_p2 = pnand %p3620_p1, %p3890_p13 }
  0x5f   : > { %p3623_p4 = pneg %p3622_p2 }
  0x61   : > { %p3628_p8 = pnand %p3626_p6, %p3623_p4 }
  0x63   : > { %3631 = shalt.err (!%p3628_p8)
}
  0x64   : > { %s3632_s16 = scalar_lea.vmem %s363_s24, 1024  ;;  %p3640_p3 = scmp.lt.s32.totalorder %s363_s24, %s363_s24 }
  0x65   : > { %p3633_p10 = scmp.ne.s32.totalorder %s363_s24, %s3632_s16  ;;  %p3641_p5 = scmp.lt.s32.totalorder %s3632_s16, %s3632_s16 }
  0x67   : > { %p3635_p12 = pnand %p3633_p10, %p3890_p13  ;;  %p3642_p7 = por %p3641_p5, %p3640_p3 }
  0x69   : > { %p3636_p0 = pneg %p3635_p12 }
  0x6b   : > { %p3643_p9 = pnand %p3642_p7, %p3636_p0 }
  0x6d   : > { %3646 = shalt.err (!%p3643_p9)
}
  0x6e   : > { %s5352_s30 = smov 64   ;;  %s3973_s22 = sadd.s32 1, %s3751_s20  }
  0x6f   : > { %3421 = dma.hbm_to_vmem [thread:$0]  (!%p3878_p11), %s5300_s9, 1024, %s363_s24, [#allocation9], %s5352_s30, %s5352_s30, %s3756_s13  }
  0x70   : > { %s36_s28 = sadd.s32 1, %s3747_s19  ;;  %s33_s17 = ssub.s32 %s3751_s20, %s3973_s22 }
  0x71   : > { %p43_p13 = scmp.ne.s32.totalorder %s3747_s19, %s3743_s18  ;;  %p34_p1 = scmp.eq.s32.totalorder %s33_s17, 0 }
  0x72   : > { %p44_p2 = scmp.eq.s32.totalorder %s3751_s20, 0  ;;  %p5353_p4 = scmp.eq.s32.totalorder %s3850_s21, 1 }
  0x73   : > { %p3434_p8 = scmp.lt.s32.totalorder %s3751_s20, 2  ;;  %s379_s26 = sand.u32 1, %s3747_s19  }
  0x74   : > { %p3983_p6 = por %p5353_p4, %p43_p13  ;;  %p45_p10 = por %p44_p2, %p43_p13 }
  0x75   : > { %s3989_s15 = scalar_select %p34_p1, %s3747_s19, %s36_s28  }
  0x76   : > { %s3024_s29 = sshll.u32 %s379_s26, 8  ;;  %s3074_s13 = sshll.u32 %s3751_s20, 12 }
  0x77   : > { %s3996_s6 = scalar_lea.hbm %s5291_s0, %s3074_s13  ;;  %s383_s16 = scalar_lea.vmem [#allocation2], %s3024_s29 }
  0x78   : > { %s391_s30 = sshll.u32 %s383_s16, 4  ;;  %p4000_p11 = pnand %p3434_p8, %p45_p10  ;;  %s3998_s30 = int_to_ptr.vmem [resolvable:$true] %s391_s30 }
  0x79   : > { %s4004_s8 = scalar_lea.sflag [#allocation3], %s379_s26  ;;  %s3647_s28 = scalar_lea.hbm %s3996_s6, 4096 }
  0x7a   : > { %p3648_p12 = scmp.ne.s32.totalorder %s3996_s6, %s3647_s28  ;;  %p3649_p0 = pneg %p4000_p11 }
  0x7b   : > { %s3652_s13 = scalar_lea.hbm %s5291_s0, 8192  ;;  %p3653_p7 = scmp.lt.u32.totalorder %s3996_s6, %s5291_s0 }
  0x7c   : > { %p3650_p3 = pnand %p3649_p0, %p3648_p12  ;;  %p3654_p9 = scmp.lt.u32.totalorder %s3652_s13, %s3647_s28 }
  0x7d   : > { %p3656_p1 = scmp.lt.u32.totalorder %s3647_s28, %s3996_s6 }
  0x7e   : > { %p3651_p5 = pneg %p3650_p3  ;;  %p3655_p13 = por %p3654_p9, %p3653_p7 }
  0x80   : > { %p3657_p2 = por %p3656_p1, %p3655_p13 }
  0x82   : > { %p3658_p4 = pnand %p3657_p2, %p3651_p5 }
  0x84   : > { %3661 = shalt.err (!%p3658_p4)
}
  0x85   : > { %s3662_s26 = scalar_lea.vmem %s3998_s30, 4096  ;;  %s3761_s16 = smov [#allocation2]  }
  0x86   : > { %p3663_p8 = scmp.ne.s32.totalorder %s3998_s30, %s3662_s26  ;;  %s3667_s17 = sshll.u32 %s3761_s16, 4  ;;  %s3668_s17 = int_to_ptr.vmem [resolvable:$false] %s3667_s17 }
  0x87   : > { %s3669_s29 = scalar_lea.vmem %s3668_s17, 8192  ;;  %p3670_p3 = scmp.lt.s32.totalorder %s3998_s30, %s3668_s17 }
  0x88   : > { %p3665_p10 = pnand %p3663_p8, %p3649_p0  ;;  %p3671_p7 = scmp.lt.s32.totalorder %s3669_s29, %s3662_s26 }
  0x8a   : > { %p3666_p12 = pneg %p3665_p10  ;;  %p3672_p9 = por %p3671_p7, %p3670_p3 }
  0x8c   : > { %p3673_p13 = pnand %p3672_p9, %p3666_p12 }
  0x8e   : > { %3676 = shalt.err (!%p3673_p13)
}
  0x8f   : > { %3425 = dma.hbm_to_vmem [thread:$0]  (!%p4000_p11), %s3996_s6, 4096, %s3998_s30, %s4004_s8, %s3758_s10, %s3758_s10, %s3759_s11  }
  0x90   : > { %p5356_p0 = scmp.ne.s32.totalorder %s5349_s25, 0 }
  0x92   : > { %403 = sbr.rel (%p5356_p0) target bundleno = 1327 (0x52f), region = 64 }
  0x99   : > { %s4038_s28 = sand.u32 1, %s3743_s18   ;;  %p5357_p5 = scmp.ne.s32.totalorder %s5346_s23, 0 }
  0x9a   : > { %s3029_s13 = sshll.u32 %s4038_s28, 8  ;;  %s406_s24 = scalar_lea.sflag [#allocation3], %s4038_s28 }
  0x9b   : > { %s4044_s12 = scalar_lea.vmem [#allocation2], %s3029_s13 }
  0x9c   : > { %3722 = dma.done.wait (%p5357_p5), %s406_s24, 4096  }
  0x9d   : > { %3724 = vsyncadd (%p5357_p5), %s406_s24, 4294963200  ;;  %p5358_p11 = scmp.eq.s32.totalorder %s3850_s21, 0 }
  0x9f   : > { %3726 = dma.done.wait (%p5358_p11), [#allocation6], 3072   ;;  %p5359_p1 = pmov %p5358_p11 }
  0xa1   : > { %3728 = vsyncadd (%p5359_p1), [#allocation6], 4294964224  ;;  %p5360_p2 = pmov %p5359_p1 }
  0xa2   : > { %p5361_p4 = pmov %p5359_p1 }
  0xa3   : > { %3730 = dma.done.wait (%p5360_p2), [#allocation9], 3072  }
  0xa4   : > { %3732 = vsyncadd (%p5361_p4), [#allocation9], 4294964224  ;;  %v3486_v0 = vld [vmem:[#allocation5] sm:$0xff]   ;;  %v3487_v1 = vld [vmem:[#allocation5 + $0x8] sm:$0xff]   ;;  %v907_v56 = vlaneseq  ;;  %vm3764_vm10 = vmmov 0   ;;  %vm2167_vm11 = vcmask 1041409  }
  0xa5   : > { %3159 = vmatprep.subr.bf16.mxu0 %v3486_v0  ;;  %3373 = vmatprep.subr.bf16.mxu1 %v3486_v0  ;;  %v3488_v2 = vld [vmem:[#allocation5 + $0x10] sm:$0xff]   ;;  %v3489_v3 = vld [vmem:[#allocation5 + $0x18] sm:$0xff]   ;;  %v467_v4 = vld [vmem:[%s4044_s12] sm:$0xff]  ;;  %vm2169_vm12 = vcmask 1042434   ;;  %vm2171_vm13 = vcmask 1043459   ;;  %s5427_s25 = sld [smem:[#allocation29_spill]] }
  0xa6   : > { %3160 = vmatpush3.bf16.msra.mxu0 %v3486_v0  ;;  %3381 = vmatpush3.bf16.msra.mxu1 %v3486_v0  ;;  %v468_v5 = vld [vmem:[%s4044_s12 + $0x8] sm:$0xff]  ;;  %v483_v6 = vld [vmem:[%s4044_s12 + $0x80] sm:$0xff]  ;;  %v3492_v12 = vld [vmem:[#allocation5 + $0x30] sm:$0xff]   ;;  %v4090_v57 = vshrl.u32 %v907_v56, 7  ;;  %s5428_s6 = sld [smem:[#allocation30_spill]]  ;;  %s5430_s27 = sld [smem:[#allocation31_spill]] }
  0xa7   : > { %3161 = vmatprep.subr.bf16.mxu0 %v3487_v1  ;;  %3374 = vmatprep.subr.bf16.mxu1 %v3487_v1  ;;  %v499_v7 = vpack.c.bf16 %v468_v5, %v467_v4  ;;  %v484_v8 = vld [vmem:[%s4044_s12 + $0x88] sm:$0xff]  ;;  %v3490_v10 = vld [vmem:[#allocation5 + $0x20] sm:$0xff]   ;;  %v3493_v13 = vld [vmem:[#allocation5 + $0x38] sm:$0xff]   ;;  %s5148_s26 = scalar_lea.vmem [#allocation11], %s3029_s13  ;;  %s3076_s13 = sshll.u32 %s3850_s21, 12 }
  0xa8   : > { %v507_v9 = vpack.c.bf16 %v484_v8, %v483_v6  ;;  %v3491_v11 = vld [vmem:[#allocation5 + $0x28] sm:$0xff]   ;;  %v469_v14 = vld [vmem:[%s4044_s12 + $0x10] sm:$0xff]  ;;  %v470_v15 = vld [vmem:[%s4044_s12 + $0x18] sm:$0xff]  ;;  %v916_v58 = vadd.s32 64, %v4090_v57  ;;  %v915_v59 = vadd.s32 56, %v4090_v57  ;;  %v932_v60 = vadd.s32 192, %v4090_v57 }
  0xa9   : > { %3175 = vmatprep.mubr.bf16.mxu0 %v499_v7  ;;  %v485_v16 = vld [vmem:[%s4044_s12 + $0x90] sm:$0xff]  ;;  %v486_v17 = vld [vmem:[%s4044_s12 + $0x98] sm:$0xff]  ;;  %v471_v18 = vld [vmem:[%s4044_s12 + $0x20] sm:$0xff]  ;;  %v500_v22 = vpack.c.bf16 %v470_v15, %v469_v14  ;;  %v931_v61 = vadd.s32 184, %v4090_v57  ;;  %v5316_v8 = vmov 0.0   ;;  %vm1356_vm5 = vcmp.lt.s32.totalorder %v4090_v57, 1 }
  0xaa   : > { %3162 = vmatpush3.bf16.msra.mxu0 %v3487_v1  ;;  %3382 = vmatpush3.bf16.msra.mxu1 %v3487_v1  ;;  %v472_v19 = vld [vmem:[%s4044_s12 + $0x28] sm:$0xff]  ;;  %v487_v20 = vld [vmem:[%s4044_s12 + $0xa0] sm:$0xff]  ;;  %v508_v23 = vpack.c.bf16 %v486_v17, %v485_v16  ;;  %v473_v26 = vld [vmem:[%s4044_s12 + $0x30] sm:$0xff]  ;;  %v1000_v62 = vand.u32 63, %v916_v58  ;;  %v993_v63 = vand.u32 63, %v915_v59  ;;  %v1112_v0 = vand.u32 63, %v932_v60 }
  0xab   : > { %3163 = vmatprep.subr.bf16.mxu0 %v3488_v2  ;;  %3375 = vmatprep.subr.bf16.mxu1 %v3488_v2  ;;  %v488_v21 = vld [vmem:[%s4044_s12 + $0xa8] sm:$0xff]  ;;  %v501_v24 = vpack.c.bf16 %v472_v19, %v471_v18  ;;  %v474_v27 = vld [vmem:[%s4044_s12 + $0x38] sm:$0xff]  ;;  %v489_v28 = vld [vmem:[%s4044_s12 + $0xb0] sm:$0xff]  ;;  %v1105_v1 = vand.u32 63, %v931_v61  ;;  %vm1751_vm6 = vcmp.lt.s32.totalorder %v4090_v57, 7  ;;  %s2906_s16 = sshll.u32 %s5148_s26, 4  ;;  %s5243_s16 = int_to_ptr.vmem [resolvable:$true] %s2906_s16 }
  0xac   : > { %3191 = vmatprep.mubr.bf16.mxu1 %v507_v9  ;;  %v509_v25 = vpack.c.bf16 %v488_v21, %v487_v20  ;;  %v490_v29 = vld [vmem:[%s4044_s12 + $0xb8] sm:$0xff]  ;;  %v475_v30 = vld [vmem:[%s4044_s12 + $0x40] sm:$0xff]  ;;  %v476_v31 = vld [vmem:[%s4044_s12 + $0x48] sm:$0xff]  ;;  %v502_v34 = vpack.c.bf16 %v474_v27, %v473_v26  ;;  %vm1397_vm0 = vcmp.ge.s32.totalorder %v1000_v62, 1  ;;  %vm1823_vm1 = vcmp.lt.s32.totalorder %v993_v63, 63  ;;  %s5431_s21 = sld [smem:[#allocation32_spill]] }
  0xad   : > { %v491_v32 = vld [vmem:[%s4044_s12 + $0xc0] sm:$0xff]  ;;  %v492_v33 = vld [vmem:[%s4044_s12 + $0xc8] sm:$0xff]  ;;  %v510_v35 = vpack.c.bf16 %v490_v29, %v489_v28  ;;  %v503_v36 = vpack.c.bf16 %v476_v31, %v475_v30  ;;  %v477_v38 = vld [vmem:[%s4044_s12 + $0x50] sm:$0xff]  ;;  %vm1413_vm2 = vcmp.ge.s32.totalorder %v1112_v0, 1  ;;  %vm1839_vm3 = vcmp.lt.s32.totalorder %v1105_v1, 63  ;;  %s2892_s23 = scalar_lea.sflag [#allocation4], %s4038_s28 }
  0xae   : > { %3164 = vmatpush3.bf16.msra.mxu0 %v3488_v2  ;;  %3383 = vmatpush3.bf16.msra.mxu1 %v3488_v2  ;;  %v511_v37 = vpack.c.bf16 %v492_v33, %v491_v32  ;;  %v478_v39 = vld [vmem:[%s4044_s12 + $0x58] sm:$0xff]  ;;  %v493_v40 = vld [vmem:[%s4044_s12 + $0xd0] sm:$0xff]  ;;  %v479_v42 = vld [vmem:[%s4044_s12 + $0x60] sm:$0xff]  ;;  %v924_v2 = vadd.s32 128, %v4090_v57  ;;  %v4106_v9 = vsel %vm1397_vm0, 1.0, %v5316_v8  ;;  %v4117_v16 = vsel %vm1839_vm3, 1.0, %v5316_v8 }
  0xaf   : > { %3165 = vmatprep.subr.bf16.mxu0 %v3489_v3  ;;  %3376 = vmatprep.subr.bf16.mxu1 %v3489_v3  ;;  %v494_v41 = vld [vmem:[%s4044_s12 + $0xd8] sm:$0xff]  ;;  %v480_v43 = vld [vmem:[%s4044_s12 + $0x68] sm:$0xff]  ;;  %v495_v44 = vld [vmem:[%s4044_s12 + $0xe0] sm:$0xff]  ;;  %v504_v46 = vpack.c.bf16 %v478_v39, %v477_v38  ;;  %s3766_s10 = smov [#allocation11]  }
  0xb0   : > { %v496_v45 = vld [vmem:[%s4044_s12 + $0xe8] sm:$0xff]  ;;  %v512_v47 = vpack.c.bf16 %v494_v41, %v493_v40  ;;  %v505_v48 = vpack.c.bf16 %v480_v43, %v479_v42  ;;  %v481_v50 = vld [vmem:[%s4044_s12 + $0x70] sm:$0xff]  ;;  %v482_v51 = vld [vmem:[%s4044_s12 + $0x78] sm:$0xff]  ;;  %v1056_v5 = vand.u32 63, %v924_v2  ;;  %s3681_s11 = sshll.u32 %s3766_s10, 4  ;;  %s3682_s11 = int_to_ptr.vmem [resolvable:$false] %s3681_s11 }
  0xb1   : > { %v513_v49 = vpack.c.bf16 %v496_v45, %v495_v44  ;;  %v497_v52 = vld [vmem:[%s4044_s12 + $0xf0] sm:$0xff]  ;;  %v498_v53 = vld [vmem:[%s4044_s12 + $0xf8] sm:$0xff]  ;;  %v506_v54 = vpack.c.bf16 %v482_v51, %v481_v50  ;;  %v4103_v4 = vld [vmem:[%s5293_s2] ss:$0 sm:$0xff]  ;;  %p3684_p3 = scmp.lt.s32.totalorder %s5243_s16, %s3682_s11 }
  0xb2   : > { %3166 = vmatpush3.bf16.msra.mxu0 %v3489_v3  ;;  %3384 = vmatpush3.bf16.msra.mxu1 %v3489_v3  ;;  %v514_v55 = vpack.c.bf16 %v498_v53, %v497_v52  ;;  %v4098_v3 = vadd.s32 120, %v4090_v57  ;;  %vm4122_vm4 = vcmp.ge.s32.totalorder %v1056_v5, 1  ;;  %v4138_v59 = vld [vmem:[%s5294_s3 + $0x1] ss:$0 sm:$0xff]  ;;  %s5241_s24 = scalar_lea.hbm %s5431_s21, %s3076_s13 }
  0xb3   : > { %3167 = vmatprep.subr.bf16.mxu0 %v3490_v10  ;;  %3377 = vmatprep.subr.bf16.mxu1 %v3490_v10 }
  0xb4   : > { %v1049_v17 = vand.u32 63, %v4098_v3 }
  0xb6   : > { %3168 = vmatpush3.bf16.msra.mxu0 %v3490_v10  ;;  %3385 = vmatpush3.bf16.msra.mxu1 %v3490_v10  ;;  %v4109_v10 = vsel %vm1823_vm1, 1.0, %v5316_v8  ;;  %vm4205_vm7 = vcmp.lt.s32.totalorder %v1049_v17, 63 }
  0xb7   : > { %3169 = vmatprep.subr.bf16.mxu0 %v3491_v11  ;;  %3378 = vmatprep.subr.bf16.mxu1 %v3491_v11 }
  0xba   : > { %3170 = vmatpush3.bf16.msra.mxu0 %v3491_v11  ;;  %3386 = vmatpush3.bf16.msra.mxu1 %v3491_v11  ;;  %v4112_v11 = vsel %vm1413_vm2, 1.0, %v5316_v8 }
  0xbb   : > { %3171 = vmatprep.subr.bf16.mxu0 %v3492_v12  ;;  %3379 = vmatprep.subr.bf16.mxu1 %v3492_v12 }
  0xbe   : > { %3172 = vmatpush3.bf16.msra.mxu0 %v3492_v12  ;;  %3387 = vmatpush3.bf16.msra.mxu1 %v3492_v12 }
  0xbf   : > { %3173 = vmatprep.subr.bf16.mxu0 %v3493_v13  ;;  %3380 = vmatprep.subr.bf16.mxu1 %v3493_v13 }
  0xc2   : > { %3174 = vmatpush3.bf16.msra.mxu0 %v3493_v13  ;;  %3388 = vmatpush3.bf16.msra.mxu1 %v3493_v13 }
  0xc5   : > { %3176 = vmatmul.mubr.bf16.vlgmr.msra.gmra.mrb[0].mxu0 %v500_v22  ;;  %3192 = vmatmul.mubr.bf16.vlgmr.msra.gmra.mrb[0].mxu1 %v508_v23  ;;  %v4127_v23 = vadd.s32 248, %v4090_v57 }
  0xc6   : > { %3179 = vmatprep.mubr.bf16.mxu0 %v501_v24  ;;  %3195 = vmatprep.mubr.bf16.mxu1 %v509_v25 }
  0xcd   : > { %3180 = vmatmul.mubr.bf16.gmra.mrb[4].mxu0 %v502_v34  ;;  %3196 = vmatmul.mubr.bf16.gmra.mrb[4].mxu1 %v510_v35 }
  0xce   : > { %3183 = vmatprep.mubr.bf16.mxu0 %v503_v36  ;;  %3199 = vmatprep.mubr.bf16.mxu1 %v511_v37 }
  0xd5   : > { %3184 = vmatmul.mubr.bf16.gmra.mrb[8].mxu0 %v504_v46  ;;  %3200 = vmatmul.mubr.bf16.gmra.mrb[8].mxu1 %v512_v47 }
  0xd6   : > { %3187 = vmatprep.mubr.bf16.mxu0 %v505_v48  ;;  %3203 = vmatprep.mubr.bf16.mxu1 %v513_v49 }
  0xdd   : > { %3188 = vmatmul.mubr.bf16.gmra.mrb[12].mxu0 %v506_v54  ;;  %3204 = vmatmul.mubr.bf16.gmra.mrb[12].mxu1 %v514_v55 }
 0x198   : > { %v3177_v6 = vpop.f32.mrb[0].mxu0  ;;  %v3193_v7 = vpop.f32.mrb[0].mxu1 }
 0x199   : > { %v629_v12 = vadd.f32 %v3177_v6, %v4103_v4  ;;  %v693_v13 = vadd.f32 %v3193_v7, %v4103_v4  ;;  %v620_v14 = vpop.f32.mrb[1].mxu0  ;;  %v684_v15 = vpop.f32.mrb[1].mxu1 }
 0x19a   : > { %v621_v18 = vadd.f32 %v4103_v4, %v620_v14  ;;  %v685_v19 = vadd.f32 %v4103_v4, %v684_v15  ;;  %v3178_v20 = vpop.f32.mrb[2].mxu0  ;;  %v3194_v21 = vpop.f32.mrb[2].mxu1 }
 0x19b   : > { %v749_v24 = vadd.f32 3.0, %v629_v12  ;;  %v765_v25 = vadd.f32 3.0, %v693_v13  ;;  %v632_v26 = vadd.f32 %v3178_v20, %v4103_v4  ;;  %v696_v27 = vadd.f32 %v3194_v21, %v4103_v4  ;;  %v623_v28 = vpop.f32.mrb[3].mxu0  ;;  %v687_v29 = vpop.f32.mrb[3].mxu1 }
 0x19c   : > { %v747_v30 = vadd.f32 3.0, %v621_v18  ;;  %v763_v31 = vadd.f32 3.0, %v685_v19  ;;  %v624_v32 = vadd.f32 %v4103_v4, %v623_v28  ;;  %v688_v33 = vadd.f32 %v4103_v4, %v687_v29 }
 0x19d   : > { %v781_v34 = vmax.f32 %v749_v24, 0.0  ;;  %v797_v35 = vmax.f32 %v765_v25, 0.0  ;;  %v750_v36 = vadd.f32 3.0, %v632_v26  ;;  %v766_v37 = vadd.f32 3.0, %v696_v27 }
 0x19e   : > { %v779_v38 = vmax.f32 %v747_v30, 0.0  ;;  %v795_v39 = vmax.f32 %v763_v31, 0.0  ;;  %v748_v40 = vadd.f32 3.0, %v624_v32  ;;  %v764_v41 = vadd.f32 3.0, %v688_v33 }
 0x19f   : > { %v813_v42 = vmin.f32 %v781_v34, 6.0  ;;  %v829_v43 = vmin.f32 %v797_v35, 6.0  ;;  %v782_v44 = vmax.f32 %v750_v36, 0.0  ;;  %v798_v45 = vmax.f32 %v766_v37, 0.0  ;;  %v4176_v34 = vld [vmem:[%s5294_s3] ss:$0 sm:$0xff] }
 0x1a0   : > { %v811_v46 = vmin.f32 %v779_v38, 6.0  ;;  %v827_v47 = vmin.f32 %v795_v39, 6.0  ;;  %v780_v48 = vmax.f32 %v748_v40, 0.0  ;;  %v796_v49 = vmax.f32 %v764_v41, 0.0  ;;  %v3181_v50 = vpop.f32.mrb[4].mxu0  ;;  %v3197_v51 = vpop.f32.mrb[4].mxu1 }
 0x1a1   : > { %v845_v52 = vmul.f32 %v813_v42, %v629_v12  ;;  %v861_v53 = vmul.f32 %v829_v43, %v693_v13  ;;  %v814_v54 = vmin.f32 %v782_v44, 6.0  ;;  %v830_v55 = vmin.f32 %v798_v45, 6.0  ;;  %v636_v56 = vpop.f32.mrb[5].mxu0  ;;  %v700_v58 = vpop.f32.mrb[5].mxu1 }
 0x1a2   : > { %v843_v60 = vmul.f32 %v811_v46, %v621_v18  ;;  %v859_v61 = vmul.f32 %v827_v47, %v685_v19  ;;  %v812_v62 = vmin.f32 %v780_v48, 6.0  ;;  %v828_v63 = vmin.f32 %v796_v49, 6.0  ;;  %v4140_v0 = vpop.f32.mrb[6].mxu0  ;;  %v4142_v1 = vpop.f32.mrb[6].mxu1 }
 0x1a3   : > { %v877_v2 = vmul.f32 0.16666667, %v845_v52  ;;  %v4144_v5 = vmul.f32 0.16666667, %v861_v53  ;;  %v846_v6 = vmul.f32 %v814_v54, %v632_v26  ;;  %v4146_v7 = vpop.f32.mrb[7].mxu0  ;;  %v4148_v12 = vpop.f32.mrb[7].mxu1  ;;  %v862_v15 = vmul.f32 %v830_v55, %v696_v27 }
 0x1a4   : > { %v4150_v13 = vmul.f32 0.16666667, %v843_v60  ;;  %v4152_v14 = vmul.f32 0.16666667, %v859_v61  ;;  %v844_v18 = vmul.f32 %v812_v62, %v624_v32  ;;  %v860_v19 = vmul.f32 %v828_v63, %v688_v33  ;;  %v4239_v63 = vld [vmem:[%s5294_s3 + $0x2] ss:$0 sm:$0xff] }
 0x1a5   : > { %v4157_v20 = vsel %vm4122_vm4, 1.0, %v5316_v8  ;;  %v1326_v25 = vrot.slane %v877_v2, 7  ;;  %v1657_v26 = vmul.f32 %v4138_v59, %v877_v2  ;;  %v1721_v28 = vrot.slane %v877_v2, 1 }
 0x1a6   : > { %5364 = vst [vmem:[#allocation18_spill] sm:$0xff] %v4150_v13  ;;  %5365 = vst [vmem:[#allocation19_spill] sm:$0xff] %v4152_v14  ;;  %v1342_v29 = vrot.slane %v4144_v5, 7  ;;  %v1737_v30 = vrot.slane %v4144_v5, 1  ;;  %v5314_v27 = vrot.slane %v4150_v13, 7  ;;  %v5315_v31 = vrot.slane %v4150_v13, 1 }
 0x1a7   : > { %5366 = vst [vmem:[#allocation20_spill] sm:$0xff] %v4157_v20  ;;  %v5318_v22 = vrot.slane %v4152_v14, 7  ;;  %v4169_v32 = vmul.f32 %v4138_v59, %v4144_v5  ;;  %v4171_v33 = vmul.f32 0.16666667, %v846_v6  ;;  %v4178_v35 = vmul.f32 0.16666667, %v862_v15 }
 0x1a8   : > { %v876_v36 = vmul.f32 0.16666667, %v844_v18  ;;  %v5319_v37 = vrot.slane %v4152_v14, 1  ;;  %v4181_v38 = vmul.f32 0.16666667, %v860_v19  ;;  %v4184_v39 = vadd.f32 %v3181_v50, %v4103_v4  ;;  %v4189_v41 = vpop.f32.mrb[8].mxu0 }
 0x1a9   : > { %v4187_v40 = vadd.f32 %v3197_v51, %v4103_v4  ;;  %v4191_v42 = vpop.f32.mrb[8].mxu1  ;;  %v5312_v43 = vrot.slane %v4171_v33, 7  ;;  %v5311_v44 = vrot.slane %v4171_v33, 1  ;;  %v5310_v45 = vrot.slane %v4178_v35, 7  ;;  %v4199_v47 = vpop.f32.mrb[9].mxu0 }
 0x1aa   : > { %v4197_v46 = vadd.f32 %v4103_v4, %v636_v56  ;;  %v4201_v48 = vpop.f32.mrb[9].mxu1  ;;  %v1658_v50 = vmul.f32 %v4138_v59, %v4171_v33  ;;  %v5313_v51 = vrot.slane %v4178_v35, 1  ;;  %v1325_v52 = vrot.slane %v876_v36, 7  ;;  %v4215_v54 = vpop.f32.mrb[10].mxu0 }
 0x1ab   : > { %v4213_v53 = vadd.f32 %v4103_v4, %v700_v58  ;;  %v4217_v55 = vpop.f32.mrb[10].mxu1  ;;  %v1385_v3 = vsel %vm1356_vm5, %v1326_v25, %v5312_v43  ;;  %v1780_v17 = vsel %vm1751_vm6, %v1721_v28, %v5311_v44  ;;  %v1369_v56 = vsel %vm1356_vm5, %v1342_v29, %v5310_v45  ;;  %v4231_v60 = vpop.f32.mrb[11].mxu0 }
 0x1ac   : > { %v1720_v58 = vrot.slane %v876_v36, 1  ;;  %v4233_v61 = vpop.f32.mrb[11].mxu1  ;;  %v1589_v62 = vmul.f32 %v4176_v34, %v1385_v3  ;;  %v1605_v2 = vmul.f32 %v4176_v34, %v1369_v56  ;;  %v1674_v6 = vmul.f32 %v4138_v59, %v4178_v35 }
 0x1ad   : > { %v1764_v15 = vsel %vm1751_vm6, %v1737_v30, %v5313_v51  ;;  %v1386_v18 = vsel %vm1356_vm5, %v1325_v52, %v1326_v25  ;;  %v1387_v19 = vsel %vm1356_vm5, %v5314_v27, %v1325_v52  ;;  %v1656_v3 = vmul.f32 %v4138_v59, %v876_v36 }
 0x1ae   : > { %v1781_v56 = vsel %vm1751_vm6, %v1720_v58, %v1721_v28  ;;  %v4259_v45 = vadd.f32 %v1658_v50, %v1589_v62  ;;  %v4261_v44 = vadd.f32 %v1674_v6, %v1605_v2  ;;  %v1587_v43 = vmul.f32 %v4176_v34, %v1387_v19 }
 0x1af   : > { %v1588_v51 = vmul.f32 %v4176_v34, %v1386_v18  ;;  %v1983_v25 = vmul.f32 %v4239_v63, %v1780_v17  ;;  %v1782_v52 = vsel %vm1751_vm6, %v5315_v31, %v1720_v58  ;;  %v1982_v36 = vmul.f32 %v4239_v63, %v1781_v56 }
 0x1b0   : > { %v1341_v27 = vrot.slane %v4181_v38, 7  ;;  %v4272_v28 = vpop.f32.mrb[12].mxu0  ;;  %v4274_v50 = vpop.f32.mrb[12].mxu1  ;;  %v1688_v62 = vadd.f32 %v1656_v3, %v1587_v43  ;;  %v1672_v6 = vmul.f32 %v4138_v59, %v4181_v38  ;;  %v1736_v17 = vrot.slane %v4181_v38, 1 }
 0x1b1   : > { %v1689_v2 = vadd.f32 %v1657_v26, %v1588_v51  ;;  %v4279_v18 = vpop.f32.mrb[13].mxu0  ;;  %v4281_v19 = vpop.f32.mrb[13].mxu1  ;;  %v753_v43 = vadd.f32 3.0, %v4184_v39  ;;  %v769_v26 = vadd.f32 3.0, %v4187_v40  ;;  %v648_v49 = vadd.f32 %v4140_v0, %v4103_v4 }
 0x1b2   : > { %v1370_v58 = vsel %vm1356_vm5, %v1341_v27, %v1342_v29  ;;  %v1371_v56 = vsel %vm1356_vm5, %v5318_v22, %v1341_v27  ;;  %v4291_v51 = vpop.f32.mrb[14].mxu0  ;;  %v4293_v3 = vpop.f32.mrb[14].mxu1  ;;  %v4295_v38 = vadd.f32 %v1982_v36, %v1688_v62  ;;  %v1765_v27 = vsel %vm1751_vm6, %v1736_v17, %v1737_v30 }
 0x1b3   : > { %v4297_v31 = vadd.f32 %v1983_v25, %v1689_v2  ;;  %v1603_v24 = vmul.f32 %v4176_v34, %v1371_v56  ;;  %v1604_v29 = vmul.f32 %v4176_v34, %v1370_v58  ;;  %v4301_v21 = vpop.f32.mrb[15].mxu0  ;;  %v4303_v8 = vpop.f32.mrb[15].mxu1  ;;  %v4313_v36 = vsel %vm1751_vm6, %v5319_v37, %v1736_v17 }
 0x1b4   : > { %5369 = vst [vmem:[#allocation21_spill] sm:$0xff] %v4301_v21  ;;  %5370 = vst [vmem:[#allocation22_spill] sm:$0xff] %v4303_v8  ;;  %v785_v25 = vmax.f32 %v753_v43, 0.0  ;;  %v801_v62 = vmax.f32 %v769_v26, 0.0  ;;  %v1999_v2 = vmul.f32 %v4239_v63, %v1764_v15  ;;  %v5371_v22 = vmov 0.0  }
 0x1b5   : > { %v1704_v58 = vadd.f32 %v1672_v6, %v1603_v24  ;;  %v1705_v56 = vadd.f32 %v4169_v32, %v1604_v29  ;;  %v4320_v5 = vsel %vm4205_vm7, 1.0, %v5371_v22  ;;  %v1998_v30 = vmul.f32 %v4239_v63, %v1765_v27 }
 0x1b6   : > { %5372 = vst [vmem:[#allocation23_spill] sm:$0xff] %v4320_v5  ;;  %v817_v20 = vmin.f32 %v785_v25, 6.0  ;;  %v833_v8 = vmin.f32 %v801_v62, 6.0  ;;  %v5373_v21 = vand.u32 63, %v4090_v57  ;;  %v751_v24 = vadd.f32 3.0, %v4197_v46 }
 0x1b7   : > { %v4329_v43 = vadd.f32 %v1999_v2, %v1705_v56  ;;  %v767_v32 = vadd.f32 3.0, %v4213_v53  ;;  %v4335_v15 = vadd.f32 %v1998_v30, %v1704_v58  ;;  %v754_v25 = vadd.f32 3.0, %v648_v49 }
 0x1b8   : > { %vm4325_vm8 = vcmp.ge.s32.totalorder %v5373_v21, 1  ;;  %v849_v6 = vmul.f32 %v817_v20, %v4184_v39  ;;  %v865_v26 = vmul.f32 %v833_v8, %v4187_v40  ;;  %v712_v21 = vadd.f32 %v4142_v1, %v4103_v4 }
 0x1b9   : > { %v783_v29 = vmax.f32 %v751_v24, 0.0  ;;  %v799_v27 = vmax.f32 %v767_v32, 0.0  ;;  %v5376_v62 = vand.u32 63, %v4127_v23  ;;  %v4350_v20 = vsel %vm4325_vm8, 1.0, %v5371_v22 }
 0x1ba   : > { %v4343_v2 = vmul.f32 0.16666667, %v849_v6  ;;  %v4345_v56 = vmul.f32 0.16666667, %v865_v26  ;;  %v770_v0 = vadd.f32 3.0, %v712_v21  ;;  %5377 = vst [vmem:[#allocation24_spill] sm:$0xff] %v4350_v20  ;;  %v640_v1 = vadd.f32 %v4103_v4, %v4146_v7 }
 0x1bb   : > { %vm1847_vm9 = vcmp.lt.s32.totalorder %v5376_v62, 63  ;;  %v815_v8 = vmin.f32 %v783_v29, 6.0  ;;  %v831_v39 = vmin.f32 %v799_v27, 6.0  ;;  %v786_v40 = vmax.f32 %v754_v25, 0.0 }
 0x1bc   : > { %v4356_v23 = vmul.f32 %v4138_v59, %v4150_v13  ;;  %v4360_v58 = vmul.f32 %v4138_v59, %v4152_v14  ;;  %v4363_v30 = vmul.f32 %v4239_v63, %v1782_v52  ;;  %v4366_v17 = vsel %vm1847_vm9, 1.0, %v5371_v22 }
 0x1bd   : > { %5381 = vst [vmem:[#allocation28_spill] sm:$0xff] %v4366_v17  ;;  %v4371_v32 = vmul.f32 %v4138_v59, %v4343_v2  ;;  %v847_v7 = vmul.f32 %v815_v8, %v4197_v46  ;;  %v863_v6 = vmul.f32 %v831_v39, %v4213_v53  ;;  %v818_v29 = vmin.f32 %v786_v40, 6.0 }
 0x1be   : > { %5378 = vst [vmem:[#allocation25_spill] sm:$0xff] %v4356_v23  ;;  %5379 = vst [vmem:[#allocation26_spill] sm:$0xff] %v4360_v58  ;;  %v802_v27 = vmax.f32 %v770_v0, 0.0  ;;  %v752_v25 = vadd.f32 3.0, %v640_v1  ;;  %v4383_v24 = vadd.f32 %v4103_v4, %v4148_v12  ;;  %v4387_v53 = vadd.f32 %v4189_v41, %v4103_v4 }
 0x1bf   : > { %5380 = vst [vmem:[#allocation27_spill] sm:$0xff] %v4363_v30  ;;  %v4377_v62 = vmul.f32 0.16666667, %v847_v7  ;;  %v4379_v37 = vmul.f32 0.16666667, %v863_v6  ;;  %v850_v22 = vmul.f32 %v818_v29, %v648_v49  ;;  %v5382_v41 = vrot.slane %v4171_v33, 7 }
 0x1c0   : > { %v834_v30 = vmin.f32 %v802_v27, 6.0  ;;  %v784_v46 = vmax.f32 %v752_v25, 0.0  ;;  %v5383_v27 = vrot.slane %v4171_v33, 1  ;;  %v5385_v33 = vrot.slane %v4178_v35, 1 }
 0x1c1   : > { %v1328_v0 = vrot.slane %v4377_v62, 7  ;;  %v1659_v8 = vmul.f32 %v4138_v59, %v4377_v62  ;;  %v1723_v39 = vrot.slane %v4377_v62, 1  ;;  %v5321_v40 = vrot.slane %v4379_v37, 7 }
 0x1c2   : > { %v1675_v12 = vmul.f32 %v4138_v59, %v4379_v37  ;;  %v5323_v49 = vrot.slane %v4379_v37, 1  ;;  %v4397_v7 = vmul.f32 0.16666667, %v850_v22  ;;  %v866_v6 = vmul.f32 %v834_v30, %v712_v21 }
 0x1c3   : > { %v1384_v29 = vsel %vm1356_vm5, %v5382_v41, %v1328_v0  ;;  %v1779_v25 = vsel %vm1751_vm6, %v5383_v27, %v1723_v39  ;;  %v5384_v62 = vrot.slane %v4178_v35, 7  ;;  %v816_v22 = vmin.f32 %v784_v46, 6.0 }
 0x1c4   : > { %v1590_v21 = vmul.f32 %v4176_v34, %v1384_v29  ;;  %v1984_v30 = vmul.f32 %v4239_v63, %v1779_v25  ;;  %v1763_v41 = vsel %vm1751_vm6, %v5385_v33, %v5323_v49  ;;  %v5322_v23 = vrot.slane %v4397_v7, 7 }
 0x1c5   : > { %v1368_v52 = vsel %vm1356_vm5, %v5384_v62, %v5321_v40  ;;  %v2000_v27 = vmul.f32 %v4239_v63, %v1763_v41  ;;  %v5324_v62 = vrot.slane %v4397_v7, 1  ;;  %v768_v46 = vadd.f32 3.0, %v4383_v24 }
 0x1c6   : > { %v1606_v26 = vmul.f32 %v4176_v34, %v1368_v52  ;;  %v1691_v29 = vadd.f32 %v1659_v8, %v1590_v21  ;;  %v4427_v25 = vadd.f32 %v1984_v30, %v4259_v45  ;;  %v4431_v40 = vmul.f32 0.16666667, %v866_v6 }
 0x1c7   : > { %v4434_v35 = vadd.f32 %v2000_v27, %v4261_v44  ;;  %v5386_v33 = vrot.slane %v4343_v2, 7  ;;  %v5387_v8 = vrot.slane %v4343_v2, 1  ;;  %v1662_v6 = vmul.f32 %v4138_v59, %v4397_v7 }
 0x1c8   : > { %v4429_v52 = vadd.f32 %v1675_v12, %v1606_v26  ;;  %v848_v26 = vmul.f32 %v816_v22, %v640_v1  ;;  %v1741_v12 = vrot.slane %v4345_v56, 1  ;;  %v5325_v21 = vrot.slane %v4431_v40, 7 }
 0x1c9   : > { %v1381_v41 = vsel %vm1356_vm5, %v5386_v33, %v5322_v23  ;;  %v1776_v45 = vsel %vm1751_vm6, %v5387_v8, %v5324_v62  ;;  %v5326_v27 = vrot.slane %v4431_v40, 1  ;;  %v725_v23 = vadd.f32 %v4191_v42, %v4103_v4 }
 0x1ca   : > { %v1593_v44 = vmul.f32 %v4176_v34, %v1381_v41  ;;  %v1987_v30 = vmul.f32 %v4239_v63, %v1776_v45  ;;  %v880_v33 = vmul.f32 0.16666667, %v848_v26  ;;  %v5388_v1 = vrot.slane %v4345_v56, 7 }
 0x1cb   : > { %v800_v41 = vmax.f32 %v768_v46, 0.0  ;;  %v757_v8 = vadd.f32 3.0, %v4387_v53  ;;  %v1678_v26 = vmul.f32 %v4138_v59, %v4431_v40  ;;  %v1760_v42 = vsel %vm1751_vm6, %v1741_v12, %v5326_v27  ;;  %v4485_v27 = vld [vmem:[%s5295_s4] ss:$0 sm:$0xff] }
 0x1cc   : > { %v4457_v49 = vadd.f32 %v1662_v6, %v1593_v44  ;;  %v1365_v22 = vsel %vm1356_vm5, %v5388_v1, %v5325_v21  ;;  %v1329_v44 = vrot.slane %v880_v33, 7  ;;  %v1660_v6 = vmul.f32 %v4138_v59, %v880_v33 }
 0x1cd   : > { %v1609_v45 = vmul.f32 %v4176_v34, %v1365_v22  ;;  %v1724_v62 = vrot.slane %v880_v33, 1  ;;  %v832_v17 = vmin.f32 %v800_v41, 6.0  ;;  %v789_v58 = vmax.f32 %v757_v8, 0.0 }
 0x1ce   : > { %v5389_v46 = vrot.slane %v4343_v2, 7  ;;  %v1383_v21 = vsel %vm1356_vm5, %v1328_v0, %v1329_v44  ;;  %v773_v20 = vadd.f32 3.0, %v725_v23  ;;  %v5390_v8 = vrot.slane %v4343_v2, 1 }
 0x1cf   : > { %v4474_v1 = vadd.f32 %v1678_v26, %v1609_v45  ;;  %v1591_v33 = vmul.f32 %v4176_v34, %v1383_v21  ;;  %v1778_v26 = vsel %vm1751_vm6, %v1723_v39, %v1724_v62  ;;  %v821_v13 = vmin.f32 %v789_v58, 6.0 }
 0x1d0   : > { %v1382_v22 = vsel %vm1356_vm5, %v1329_v44, %v5389_v46  ;;  %v1777_v45 = vsel %vm1751_vm6, %v1724_v62, %v5390_v8  ;;  %v1985_v0 = vmul.f32 %v4239_v63, %v1778_v26  ;;  %v864_v46 = vmul.f32 %v832_v17, %v4383_v24 }
 0x1d1   : > { %v1592_v41 = vmul.f32 %v4176_v34, %v1382_v22  ;;  %v1986_v44 = vmul.f32 %v4239_v63, %v1777_v45  ;;  %v1692_v5 = vadd.f32 %v1660_v6, %v1591_v33  ;;  %v805_v14 = vmax.f32 %v773_v20, 0.0 }
 0x1d2   : > { %v653_v2 = vadd.f32 %v4103_v4, %v4199_v47  ;;  %v4503_v22 = vadd.f32 %v4485_v27, %v4295_v38  ;;  %v4505_v8 = vadd.f32 %v1985_v0, %v1691_v29  ;;  %v896_v39 = vmul.f32 0.16666667, %v864_v46 }
 0x1d3   : > { %v1693_v21 = vadd.f32 %v4371_v32, %v1592_v41  ;;  %v853_v62 = vmul.f32 %v821_v13, %v4387_v53  ;;  %v4510_v17 = vadd.f32 %v4485_v27, %v4297_v31  ;;  %v4512_v58 = vadd.f32 %v1986_v44, %v1692_v5 }
 0x1d4   : > { %v837_v20 = vmin.f32 %v805_v14, 6.0  ;;  %v4518_v47 = vmul.f32 %v4239_v63, %v4313_v36  ;;  %v1677_v38 = vmul.f32 %v4138_v59, %v4345_v56  ;;  %v1345_v32 = vrot.slane %v896_v39, 7 }
 0x1d5   : > { %v4514_v24 = vadd.f32 %v1987_v30, %v1693_v21  ;;  %v1740_v29 = vrot.slane %v896_v39, 1  ;;  %v1676_v13 = vmul.f32 %v4138_v59, %v896_v39  ;;  %v4523_v53 = vmul.f32 0.16666667, %v853_v62 }
 0x1d6   : > { %v755_v31 = vadd.f32 3.0, %v653_v2  ;;  %v717_v5 = vadd.f32 %v4103_v4, %v4201_v48  ;;  %v5391_v30 = vrot.slane %v4345_v56, 7  ;;  %v5392_v36 = vrot.slane %v4379_v37, 7 }
 0x1d7   : > { %v1761_v33 = vsel %vm1751_vm6, %v1740_v29, %v1741_v12  ;;  %v5393_v41 = vrot.slane %v4379_v37, 1  ;;  %v869_v0 = vmul.f32 %v837_v20, %v725_v23  ;;  %v4546_v44 = vadd.f32 %v4485_v27, %v4335_v15 }
 0x1d8   : > { %v1366_v14 = vsel %vm1356_vm5, %v1345_v32, %v5391_v30  ;;  %v1367_v6 = vsel %vm1356_vm5, %v5392_v36, %v1345_v32  ;;  %v4550_v46 = vadd.f32 %v4485_v27, %v4329_v43  ;;  %v2003_v37 = vmul.f32 %v4239_v63, %v1760_v42 }
 0x1d9   : > { %v1762_v45 = vsel %vm1751_vm6, %v5393_v41, %v1740_v29  ;;  %v1607_v48 = vmul.f32 %v4176_v34, %v1367_v6  ;;  %v1608_v56 = vmul.f32 %v4176_v34, %v1366_v14  ;;  %v2002_v12 = vmul.f32 %v4239_v63, %v1761_v33 }
 0x1da   : > { %v2001_v26 = vmul.f32 %v4239_v63, %v1762_v45  ;;  %v787_v32 = vmax.f32 %v755_v31, 0.0  ;;  %v4559_v23 = vadd.f32 %v4485_v27, %v4427_v25  ;;  %v4563_v15 = vadd.f32 %v4485_v27, %v4434_v35 }
 0x1db   : > { %v1708_v21 = vadd.f32 %v1676_v13, %v1607_v48  ;;  %v1709_v39 = vadd.f32 %v1677_v38, %v1608_v56  ;;  %v1334_v43 = vrot.slane %v4523_v53, 7  ;;  %v771_v20 = vadd.f32 3.0, %v717_v5 }
 0x1dc   : > { %v4555_v62 = vadd.f32 %v2001_v26, %v4429_v52  ;;  %v4570_v38 = vmul.f32 0.16666667, %v869_v0  ;;  %v819_v52 = vmin.f32 %v787_v32, 6.0  ;;  %v664_v31 = vadd.f32 %v4215_v54, %v4103_v4 }
 0x1dd   : > { %v4566_v42 = vadd.f32 %v2002_v12, %v1708_v21  ;;  %v4568_v29 = vadd.f32 %v2003_v37, %v1709_v39  ;;  %v803_v13 = vmax.f32 %v771_v20, 0.0  ;;  %v728_v25 = vadd.f32 %v4217_v55, %v4103_v4 }
 0x1de   : > { %v656_v35 = vadd.f32 %v4103_v4, %v4231_v60  ;;  %v4580_v30 = vmul.f32 %v4138_v59, %v4523_v53  ;;  %v1729_v14 = vrot.slane %v4523_v53, 1  ;;  %v851_v36 = vmul.f32 %v819_v52, %v653_v2 }
 0x1df   : > { %v720_v6 = vadd.f32 %v4103_v4, %v4233_v61  ;;  %v835_v33 = vmin.f32 %v803_v13, 6.0  ;;  %v758_v41 = vadd.f32 3.0, %v664_v31  ;;  %v774_v45 = vadd.f32 3.0, %v728_v25 }
 0x1e0   : > { %v756_v54 = vadd.f32 3.0, %v656_v35  ;;  %v1350_v48 = vrot.slane %v4570_v38, 7  ;;  %v4588_v55 = vmul.f32 %v4138_v59, %v4570_v38  ;;  %v4590_v60 = vmul.f32 0.16666667, %v851_v36 }
 0x1e1   : > { %v772_v56 = vadd.f32 3.0, %v720_v6  ;;  %v867_v26 = vmul.f32 %v835_v33, %v717_v5  ;;  %v790_v0 = vmax.f32 %v758_v41, 0.0  ;;  %v806_v37 = vmax.f32 %v774_v45, 0.0 }
 0x1e2   : > { %v788_v2 = vmax.f32 %v756_v54, 0.0  ;;  %v1332_v61 = vrot.slane %v4590_v60, 7  ;;  %v1727_v21 = vrot.slane %v4590_v60, 1  ;;  %v5394_v36 = vrot.slane %v4397_v7, 7 }
 0x1e3   : > { %v804_v39 = vmax.f32 %v772_v56, 0.0  ;;  %v4595_v32 = vmul.f32 0.16666667, %v867_v26  ;;  %v822_v20 = vmin.f32 %v790_v0, 6.0  ;;  %v838_v52 = vmin.f32 %v806_v37, 6.0 }
 0x1e4   : > { %v820_v13 = vmin.f32 %v788_v2, 6.0  ;;  %v1380_v5 = vsel %vm1356_vm5, %v5394_v36, %v1332_v61  ;;  %v5395_v33 = vrot.slane %v4397_v7, 1  ;;  %v4607_v45 = vadd.f32 %v4272_v28, %v4103_v4 }
 0x1e5   : > { %v4611_v54 = vadd.f32 %v4274_v50, %v4103_v4  ;;  %v1557_v56 = vmul.f32 %v4106_v9, %v1380_v5  ;;  %v1663_v26 = vmul.f32 %v4138_v59, %v4590_v60  ;;  %v1348_v7 = vrot.slane %v4595_v32, 7 }
 0x1e6   : > { %v1775_v41 = vsel %vm1751_vm6, %v5395_v33, %v1727_v21  ;;  %v1743_v37 = vrot.slane %v4595_v32, 1  ;;  %v854_v2 = vmul.f32 %v822_v20, %v664_v31  ;;  %v870_v36 = vmul.f32 %v838_v52, %v728_v25 }
 0x1e7   : > { %v1951_v0 = vmul.f32 %v4109_v10, %v1775_v41  ;;  %v852_v33 = vmul.f32 %v820_v13, %v656_v35  ;;  %v1594_v28 = vmul.f32 %v4176_v34, %v1557_v56  ;;  %v5396_v50 = vrot.slane %v4431_v40, 7 }
 0x1e8   : > { %v836_v5 = vmin.f32 %v804_v39, 6.0  ;;  %v5397_v10 = vrot.slane %v4431_v40, 1  ;;  %v4632_v25 = vmul.f32 0.16666667, %v854_v2  ;;  %v4634_v35 = vmul.f32 0.16666667, %v870_v36 }
 0x1e9   : > { %v1988_v12 = vmul.f32 %v4239_v63, %v1951_v0  ;;  %v1364_v9 = vsel %vm1356_vm5, %v5396_v50, %v1348_v7  ;;  %v1695_v20 = vadd.f32 %v1663_v26, %v1594_v28  ;;  %v1679_v39 = vmul.f32 %v4138_v59, %v4595_v32 }
 0x1ea   : > { %v1573_v60 = vmul.f32 %v4112_v11, %v1364_v9  ;;  %v1759_v31 = vsel %vm1751_vm6, %v5397_v10, %v1743_v37  ;;  %v1335_v40 = vrot.slane %v4632_v25, 7  ;;  %v5332_v41 = vrot.slane %v4632_v25, 1 }
 0x1eb   : > { %v4637_v52 = vadd.f32 %v1988_v12, %v4457_v49  ;;  %v1967_v11 = vmul.f32 %v4117_v16, %v1759_v31  ;;  %v884_v56 = vmul.f32 0.16666667, %v852_v33  ;;  %v5331_v2 = vrot.slane %v4634_v35, 7 }
 0x1ec   : > { %v1610_v13 = vmul.f32 %v4176_v34, %v1573_v60  ;;  %v868_v26 = vmul.f32 %v836_v5, %v720_v6  ;;  %v761_v49 = vadd.f32 3.0, %v4607_v45  ;;  %v1377_v16 = vsel %vm1356_vm5, %v1334_v43, %v1335_v40 }
 0x1ed   : > { %v2004_v0 = vmul.f32 %v4239_v63, %v1967_v11  ;;  %v1772_v36 = vsel %vm1751_vm6, %v1729_v14, %v5332_v41  ;;  %v1746_v33 = vrot.slane %v4634_v35, 1  ;;  %v1597_v28 = vmul.f32 %v4176_v34, %v1377_v16 }
 0x1ee   : > { %v1711_v12 = vadd.f32 %v1679_v39, %v1610_v13  ;;  %v1666_v50 = vmul.f32 %v4138_v59, %v4632_v25  ;;  %v1361_v9 = vsel %vm1356_vm5, %v1350_v48, %v5331_v2  ;;  %v1682_v60 = vmul.f32 %v4138_v59, %v4634_v35 }
 0x1ef   : > { %v4662_v6 = vadd.f32 %v2004_v0, %v4474_v1  ;;  %v1613_v5 = vmul.f32 %v4176_v34, %v1361_v9  ;;  %v5398_v1 = vrot.slane %v4570_v38, 1  ;;  %v1333_v31 = vrot.slane %v884_v56, 7 }
 0x1f0   : > { %v4682_v39 = vadd.f32 %v1666_v50, %v1597_v28  ;;  %v1991_v11 = vmul.f32 %v4239_v63, %v1772_v36  ;;  %v1664_v13 = vmul.f32 %v4138_v59, %v884_v56  ;;  %v1728_v0 = vrot.slane %v884_v56, 1 }
 0x1f1   : > { %v1756_v10 = vsel %vm1751_vm6, %v5398_v1, %v1746_v33  ;;  %v4686_v16 = vadd.f32 %v1682_v60, %v1613_v5  ;;  %v1378_v9 = vsel %vm1356_vm5, %v1333_v31, %v1334_v43  ;;  %v1379_v2 = vsel %vm1356_vm5, %v1332_v61, %v1333_v31 }
 0x1f2   : > { %v900_v41 = vmul.f32 0.16666667, %v868_v26  ;;  %v1595_v1 = vmul.f32 %v4176_v34, %v1379_v2  ;;  %v1596_v28 = vmul.f32 %v4176_v34, %v1378_v9  ;;  %v1773_v56 = vsel %vm1751_vm6, %v1728_v0, %v1729_v14 }
 0x1f3   : > { %v1774_v36 = vsel %vm1751_vm6, %v1727_v21, %v1728_v0  ;;  %v1990_v43 = vmul.f32 %v4239_v63, %v1773_v56  ;;  %v793_v31 = vmax.f32 %v761_v49, 0.0  ;;  %v777_v21 = vadd.f32 3.0, %v4611_v54 }
 0x1f4   : > { %v1989_v50 = vmul.f32 %v4239_v63, %v1774_v36  ;;  %v1349_v5 = vrot.slane %v900_v41, 7  ;;  %v1680_v61 = vmul.f32 %v4138_v59, %v900_v41  ;;  %v1696_v26 = vadd.f32 %v1664_v13, %v1595_v1 }
 0x1f5   : > { %v1697_v2 = vadd.f32 %v4580_v30, %v1596_v28  ;;  %v1744_v60 = vrot.slane %v900_v41, 1  ;;  %v2007_v49 = vmul.f32 %v4239_v63, %v1756_v10  ;;  %v4736_v32 = vadd.f32 %v4485_v27, %v4505_v8 }
 0x1f6   : > { %v2021_v9 = vadd.f32 %v1989_v50, %v1695_v20  ;;  %v1362_v53 = vsel %vm1356_vm5, %v1349_v5, %v1350_v48  ;;  %v1363_v14 = vsel %vm1356_vm5, %v1348_v7, %v1349_v5  ;;  %v2022_v0 = vadd.f32 %v1990_v43, %v1696_v26 }
 0x1f7   : > { %v2023_v56 = vadd.f32 %v1991_v11, %v1697_v2  ;;  %v1611_v36 = vmul.f32 %v4176_v34, %v1363_v14  ;;  %v1612_v13 = vmul.f32 %v4176_v34, %v1362_v53  ;;  %v5399_v20 = vrot.slane %v4570_v38, 1 }
 0x1f8   : > { %v4716_v30 = vadd.f32 %v4485_v27, %v2021_v9  ;;  %v1758_v48 = vsel %vm1751_vm6, %v1743_v37, %v1744_v60  ;;  %v825_v7 = vmin.f32 %v793_v31, 6.0  ;;  %v4728_v11 = vadd.f32 %v4485_v27, %v2022_v0 }
 0x1f9   : > { %v1757_v41 = vsel %vm1751_vm6, %v1744_v60, %v5399_v20  ;;  %v1712_v1 = vadd.f32 %v1680_v61, %v1611_v36  ;;  %v1713_v28 = vadd.f32 %v4588_v55, %v1612_v13  ;;  %v2005_v50 = vmul.f32 %v4239_v63, %v1758_v48  ;;  %v5400_v36 = vld [vmem:[#allocation21_spill] sm:$0xff] }
 0x1fa   : > { %v2006_v38 = vmul.f32 %v4239_v63, %v1757_v41  ;;  %v857_v43 = vmul.f32 %v825_v7, %v4607_v45  ;;  %v809_v5 = vmax.f32 %v777_v21, 0.0  ;;  %v669_v10 = vadd.f32 %v4103_v4, %v4279_v18 }
 0x1fb   : > { %v2039_v37 = vadd.f32 %v2007_v49, %v1713_v28  ;;  %v733_v61 = vadd.f32 %v4103_v4, %v4281_v19  ;;  %v2097_v55 = vadd.f32 %v4728_v11, %v4716_v30  ;;  %v2037_v26 = vadd.f32 %v2005_v50, %v1711_v12  ;;  %v2140_v50 = vld [vmem:[#allocation7] sm:$0xff] }
 0x1fc   : > { %v2038_v2 = vadd.f32 %v2006_v38, %v1712_v1  ;;  %v841_v60 = vmin.f32 %v809_v5, 6.0  ;;  %v4746_v45 = vadd.f32 %v4485_v27, %v4512_v58  ;;  %v4750_v8 = vadd.f32 %v4485_v27, %v4514_v24  ;;  %v2141_v38 = vld [vmem:[#allocation7 + $0x8] sm:$0xff] }
 0x1fd   : > { %v759_v31 = vadd.f32 3.0, %v669_v10  ;;  %v775_v9 = vadd.f32 3.0, %v733_v61  ;;  %v4754_v18 = vadd.f32 %v4485_v27, %v4555_v62  ;;  %v4757_v19 = vadd.f32 %v4485_v27, %v2023_v56 }
 0x1fe   : > { %v4760_v12 = vadd.f32 %v4485_v27, %v2037_v26  ;;  %v4762_v53 = vmul.f32 0.16666667, %v857_v43  ;;  %v4765_v58 = vadd.f32 %v4485_v27, %v2038_v2  ;;  %v873_v24 = vmul.f32 %v841_v60, %v4611_v54  ;;  %v5401_v54 = vld [vmem:[#allocation22_spill] sm:$0xff] }
 0x1ff   : > { %v791_v14 = vmax.f32 %v759_v31, 0.0  ;;  %v807_v21 = vmax.f32 %v775_v9, 0.0  ;;  %v4769_v0 = vadd.f32 %v2097_v55, %v4757_v19  ;;  %v680_v62 = vadd.f32 %v4291_v51, %v4103_v4 }
 0x200   : > { %v744_v56 = vadd.f32 %v4293_v3, %v4103_v4  ;;  %v672_v13 = vadd.f32 %v4103_v4, %v5400_v36  ;;  %v4778_v20 = vadd.f32 %v4485_v27, %v2039_v37  ;;  %v4782_v7 = vadd.f32 %v4103_v4, %v5401_v54 }
 0x201   : > { %v823_v41 = vmin.f32 %v791_v14, 6.0  ;;  %v839_v48 = vmin.f32 %v807_v21, 6.0  ;;  %v762_v1 = vadd.f32 3.0, %v680_v62  ;;  %v2123_v3 = vadd.f32 %v4765_v58, %v4760_v12 }
 0x202   : > { %v778_v28 = vadd.f32 3.0, %v744_v56  ;;  %v760_v51 = vadd.f32 3.0, %v672_v13  ;;  %v4789_v43 = vmul.f32 %v4138_v59, %v4762_v53  ;;  %v4791_v5 = vmul.f32 0.16666667, %v873_v24 }
 0x203   : > { %v855_v37 = vmul.f32 %v823_v41, %v669_v10  ;;  %v871_v55 = vmul.f32 %v839_v48, %v733_v61  ;;  %v794_v4 = vmax.f32 %v762_v1, 0.0  ;;  %v776_v31 = vadd.f32 3.0, %v4782_v7 }
 0x204   : > { %v810_v26 = vmax.f32 %v778_v28, 0.0  ;;  %v792_v2 = vmax.f32 %v760_v51, 0.0  ;;  %v3326_v9 = vpack.c.bf16 %v2141_v38, %v2140_v50  ;;  %v5335_v49 = vmov 0.0|0.0  }
 0x205   : > { %v4793_v60 = vmul.f32 0.16666667, %v855_v37  ;;  %v4796_v14 = vmul.f32 0.16666667, %v871_v55  ;;  %v826_v21 = vmin.f32 %v794_v4, 6.0  ;;  %3325 = vmatprep.subr.bf16.mxu1 %v5335_v49  ;;  %v808_v41 = vmax.f32 %v776_v31, 0.0 }
 0x206   : > { %v842_v36 = vmin.f32 %v810_v26, 6.0  ;;  %v824_v54 = vmin.f32 %v792_v2, 6.0  ;;  %3327 = vmatpush3.bf16.msra.mxu1 %v3326_v9  ;;  %v5402_v38 = vrot.slane %v4632_v25, 1  ;;  %v5403_v2 = vrot.slane %v4634_v35, 7 }
 0x207   : > { %v5340_v24 = vrot.slane %v4793_v60, 7  ;;  %v1667_v10 = vmul.f32 %v4138_v59, %v4793_v60  ;;  %v5337_v61 = vrot.slane %v4793_v60, 1  ;;  %v5334_v48 = vrot.slane %v4796_v14, 7  ;;  %3328 = vmatprep.subr.bf16.mxu1 %v5335_v49 }
 0x208   : > { %v1683_v1 = vmul.f32 %v4138_v59, %v4796_v14  ;;  %v5333_v28 = vrot.slane %v4796_v14, 1  ;;  %v858_v51 = vmul.f32 %v826_v21, %v680_v62  ;;  %v874_v55 = vmul.f32 %v842_v36, %v744_v56 }
 0x209   : > { %v1376_v50 = vsel %vm1356_vm5, %v1335_v40, %v5340_v24  ;;  %v1771_v37 = vsel %vm1751_vm6, %v5402_v38, %v5337_v61  ;;  %v856_v4 = vmul.f32 %v824_v54, %v672_v13  ;;  %v1360_v40 = vsel %vm1356_vm5, %v5403_v2, %v5334_v48 }
 0x20a   : > { %v1598_v62 = vmul.f32 %v4176_v34, %v1376_v50  ;;  %v1992_v26 = vmul.f32 %v4239_v63, %v1771_v37  ;;  %v1755_v25 = vsel %vm1751_vm6, %v1746_v33, %v5333_v28  ;;  %v1614_v56 = vmul.f32 %v4176_v34, %v1360_v40 }
 0x20b   : > { %v2008_v13 = vmul.f32 %v4239_v63, %v1755_v25  ;;  %v890_v31 = vmul.f32 0.16666667, %v858_v51  ;;  %v906_v9 = vmul.f32 0.16666667, %v874_v55  ;;  %v4837_v21 = vadd.f32 %v2123_v3, %v4778_v20  ;;  %v5404_v3 = vld [vmem:[#allocation19_spill] sm:$0xff] }
 0x20c   : > { %v1733_v36 = vrot.slane %v4762_v53, 1  ;;  %v4840_v54 = vadd.f32 %v1667_v10, %v1598_v62  ;;  %v2024_v50 = vadd.f32 %v1992_v26, %v4682_v39  ;;  %v5338_v35 = vrot.slane %v4791_v5, 7 }
 0x20d   : > { %v4844_v38 = vadd.f32 %v1683_v1, %v1614_v56  ;;  %v2040_v33 = vadd.f32 %v2008_v13, %v4686_v16  ;;  %v1339_v37 = vrot.slane %v890_v31, 7  ;;  %v5339_v2 = vrot.slane %v4791_v5, 1  ;;  %v5407_v56 = vld [vmem:[#allocation20_spill] sm:$0xff] }
 0x20e   : > { %v1734_v51 = vrot.slane %v890_v31, 1  ;;  %v1355_v55 = vrot.slane %v906_v9, 7  ;;  %v888_v40 = vmul.f32 0.16666667, %v856_v4  ;;  %v5405_v25 = vrot.slane %v5404_v3, 7 }
 0x20f   : > { %v5406_v62 = vrot.slane %v4762_v53, 7  ;;  %v1750_v1 = vrot.slane %v906_v9, 1  ;;  %v840_v26 = vmin.f32 %v808_v41, 6.0  ;;  %v1670_v28 = vmul.f32 %v4138_v59, %v890_v31 }
 0x210   : > { %v1372_v10 = vsel %vm1356_vm5, %v1339_v37, %v5405_v25  ;;  %v5408_v4 = vrot.slane %v5404_v3, 1  ;;  %v4864_v25 = vadd.f32 %v4485_v27, %v2024_v50  ;;  %v1768_v49 = vsel %vm1751_vm6, %v1733_v36, %v1734_v51  ;;  %v5410_v3 = vld [vmem:[#allocation18_spill] sm:$0xff] }
 0x211   : > { %v1373_v39 = vsel %vm1356_vm5, %v5406_v62, %v1339_v37  ;;  %v1565_v16 = vmul.f32 %v5407_v56, %v1372_v10  ;;  %v5409_v37 = vld [vmem:[#allocation23_spill] sm:$0xff]  ;;  %v1357_v41 = vsel %vm1356_vm5, %v5338_v35, %v1355_v55  ;;  %v1686_v50 = vmul.f32 %v4138_v59, %v906_v9 }
 0x212   : > { %v1601_v13 = vmul.f32 %v4176_v34, %v1373_v39  ;;  %v1767_v48 = vsel %vm1751_vm6, %v1734_v51, %v5408_v4  ;;  %v5411_v39 = vrot.slane %v5410_v3, 7  ;;  %v5412_v51 = vld [vmem:[#allocation24_spill] sm:$0xff]  ;;  %v5416_v24 = vrot.slane %v4762_v53, 7 }
 0x213   : > { %v1959_v62 = vmul.f32 %v5409_v37, %v1767_v48  ;;  %v1602_v31 = vmul.f32 %v4176_v34, %v1565_v16  ;;  %v1617_v48 = vmul.f32 %v4176_v34, %v1357_v41  ;;  %v4886_v37 = vsel %vm1751_vm6, %v5339_v2, %v1750_v1  ;;  %v5413_v16 = vld [vmem:[#allocation26_spill] sm:$0xff] }
 0x214   : > { %v1702_v10 = vadd.f32 %v1670_v28, %v1601_v13  ;;  %v1388_v56 = vsel %vm1356_vm5, %v1355_v55, %v5411_v39  ;;  %v4889_v28 = vadd.f32 %v4485_v27, %v2040_v33  ;;  %v5414_v55 = vrot.slane %v5410_v3, 1 }
 0x215   : > { %v1996_v4 = vmul.f32 %v4239_v63, %v1959_v62  ;;  %v1549_v61 = vmul.f32 %v5412_v51, %v1388_v56  ;;  %v1703_v13 = vadd.f32 %v5413_v16, %v1602_v31  ;;  %v1337_v62 = vrot.slane %v888_v40, 7  ;;  %v5415_v51 = vld [vmem:[#allocation28_spill] sm:$0xff] }
 0x216   : > { %v1783_v9 = vsel %vm1751_vm6, %v1750_v1, %v5414_v55  ;;  %v1718_v56 = vadd.f32 %v1686_v50, %v1617_v48  ;;  %v1995_v2 = vmul.f32 %v4239_v63, %v1768_v49  ;;  %v5417_v3 = vrot.slane %v4793_v60, 7  ;;  %v5419_v55 = vld [vmem:[#allocation27_spill] sm:$0xff] }
 0x217   : > { %v4896_v39 = vadd.f32 %v1996_v4, %v1702_v10  ;;  %v1586_v41 = vmul.f32 %v4176_v34, %v1549_v61  ;;  %v1975_v35 = vmul.f32 %v5415_v51, %v1783_v9  ;;  %v2029_v33 = vadd.f32 %v4518_v47, %v1703_v13  ;;  %v2142_v10 = vld [vmem:[#allocation7 + $0x10] sm:$0xff]  ;;  %v2143_v4 = vld [vmem:[#allocation7 + $0x18] sm:$0xff] }
 0x218   : > { %v1374_v31 = vsel %vm1356_vm5, %v1337_v62, %v5416_v24  ;;  %v1375_v1 = vsel %vm1356_vm5, %v5417_v3, %v1337_v62  ;;  %v5418_v61 = vld [vmem:[#allocation25_spill] sm:$0xff]  ;;  %v1668_v47 = vmul.f32 %v4138_v59, %v888_v40  ;;  %v1732_v16 = vrot.slane %v888_v40, 1  ;;  %v2144_v3 = vld [vmem:[#allocation7 + $0x20] sm:$0xff] }
 0x219   : > { %v1687_v50 = vadd.f32 %v5418_v61, %v1586_v41  ;;  %v2012_v48 = vmul.f32 %v4239_v63, %v1975_v35  ;;  %v1599_v49 = vmul.f32 %v4176_v34, %v1375_v1  ;;  %v4915_v53 = vadd.f32 %v4485_v27, %v2029_v33  ;;  %v2145_v35 = vld [vmem:[#allocation7 + $0x28] sm:$0xff] }
 0x21a   : > { %v1600_v24 = vmul.f32 %v4176_v34, %v1374_v31  ;;  %v872_v13 = vmul.f32 %v840_v26, %v4782_v7  ;;  %v3329_v41 = vpack.c.bf16 %v2143_v4, %v2142_v10  ;;  %v1769_v33 = vsel %vm1751_vm6, %v1732_v16, %v1733_v36  ;;  %v2147_v4 = vld [vmem:[#allocation7 + $0x38] sm:$0xff] }
 0x21b   : > { %v2013_v9 = vadd.f32 %v5419_v55, %v1687_v50  ;;  %v4920_v62 = vadd.f32 %v2012_v48, %v1718_v56  ;;  %v1700_v51 = vadd.f32 %v1668_v47, %v1599_v49  ;;  %v2110_v1 = vadd.f32 %v4546_v44, %v4915_v53 }
 0x21c   : > { %v1701_v61 = vadd.f32 %v4789_v43, %v1600_v24  ;;  %v5420_v40 = vrot.slane %v4793_v60, 1  ;;  %v1685_v26 = vmul.f32 %v4138_v59, %v4791_v5  ;;  %v1994_v10 = vmul.f32 %v4239_v63, %v1769_v33  ;;  %3330 = vmatpush3.bf16.msra.mxu1 %v3329_v41  ;;  %v2146_v43 = vld [vmem:[#allocation7 + $0x30] sm:$0xff] }
 0x21d   : > { %v4934_v56 = vadd.f32 %v4485_v27, %v2013_v9  ;;  %v2099_v36 = vadd.f32 %v4769_v0, %v4864_v25  ;;  %v904_v50 = vmul.f32 0.16666667, %v872_v13  ;;  %v5421_v48 = vmov 0.0|0.0  }
 0x21e   : > { %v1770_v7 = vsel %vm1751_vm6, %v5420_v40, %v1732_v16  ;;  %v2027_v60 = vadd.f32 %v1995_v2, %v1701_v61  ;;  %3331 = vmatprep.subr.bf16.mxu1 %v5421_v48  ;;  %v3332_v49 = vpack.c.bf16 %v2145_v35, %v2144_v3  ;;  %v2125_v59 = vadd.f32 %v4837_v21, %v4889_v28  ;;  %v3502_v21 = vld [vmem:[%s5294_s3 + $0x1] ss:$0 sm:$0xff] }
 0x21f   : > { %v1993_v31 = vmul.f32 %v4239_v63, %v1770_v7  ;;  %v2084_v47 = vadd.f32 %v4503_v22, %v4934_v56  ;;  %v2026_v16 = vadd.f32 %v1994_v10, %v1700_v51  ;;  %v2111_v55 = vadd.f32 %v2110_v1, %v4550_v46  ;;  %v2149_v51 = vld [vmem:[#allocation7 + $0x48] sm:$0xff] }
 0x220   : > { %v1353_v9 = vrot.slane %v904_v50, 7  ;;  %v1748_v41 = vrot.slane %v904_v50, 1  ;;  %v3335_v33 = vpack.c.bf16 %v2147_v4, %v2146_v43  ;;  %v1684_v3 = vmul.f32 %v3502_v21, %v904_v50  ;;  %3333 = vmatpush3.bf16.msra.mxu1 %v3332_v49 }
 0x221   : > { %v2025_v24 = vadd.f32 %v1993_v31, %v4840_v54  ;;  %v2085_v0 = vadd.f32 %v2084_v47, %v4510_v17  ;;  %v4952_v13 = vadd.f32 %v4485_v27, %v2026_v16  ;;  %v2148_v54 = vld [vmem:[#allocation7 + $0x40] sm:$0xff]  ;;  %v5422_v35 = vrot.slane %v4791_v5, 7  ;;  %3334 = vmatprep.subr.bf16.mxu1 %v5421_v48 }
 0x222   : > { %v5423_v61 = vrot.slane %v4796_v14, 7  ;;  %v5424_v7 = vrot.slane %v4791_v5, 1  ;;  %v5425_v10 = vrot.slane %v4796_v14, 1  ;;  %v2011_v5 = vmul.f32 %v4239_v63, %v4886_v37 }
 0x223   : > { %v4949_v2 = vadd.f32 %v4485_v27, %v2025_v24  ;;  %v1358_v1 = vsel %vm1356_vm5, %v1353_v9, %v5422_v35  ;;  %v2086_v4 = vadd.f32 %v2085_v0, %v4559_v23  ;;  %v4981_v24 = vadd.f32 %v4485_v27, %v2027_v60  ;;  %v2151_v35 = vld [vmem:[#allocation7 + $0x58] sm:$0xff] }
 0x224   : > { %v1359_v40 = vsel %vm1356_vm5, %v5423_v61, %v1353_v9  ;;  %v1753_v31 = vsel %vm1751_vm6, %v1748_v41, %v5424_v7  ;;  %v1754_v43 = vsel %vm1751_vm6, %v5425_v10, %v1748_v41  ;;  %v1616_v47 = vmul.f32 %v4176_v34, %v1358_v1  ;;  %3336 = vmatpush3.bf16.msra.mxu1 %v3335_v33  ;;  %v2152_v10 = vld [vmem:[#allocation7 + $0x60] sm:$0xff] }
 0x225   : > { %v2100_v50 = vadd.f32 %v2099_v36, %v4949_v2  ;;  %v1615_v49 = vmul.f32 %v4176_v34, %v1359_v40  ;;  %v2009_v14 = vmul.f32 %v4239_v63, %v1754_v43  ;;  %v3338_v16 = vpack.c.bf16 %v2149_v51, %v2148_v54  ;;  %3337 = vmatprep.subr.bf16.mxu1 %v5421_v48  ;;  %v2150_v34 = vld [vmem:[#allocation7 + $0x50] sm:$0xff]  ;;  %v2153_v43 = vld [vmem:[#allocation7 + $0x68] sm:$0xff] }
 0x226   : > { %v1717_v21 = vadd.f32 %v1685_v26, %v1616_v47  ;;  %v2010_v0 = vmul.f32 %v4239_v63, %v1753_v31  ;;  %v2087_v37 = vadd.f32 %v2086_v4, %v4736_v32  ;;  %v2112_v60 = vadd.f32 %v2111_v55, %v4563_v15 }
 0x227   : > { %v2101_v9 = vadd.f32 %v2100_v50, %v4952_v13  ;;  %v1716_v41 = vadd.f32 %v1684_v3, %v1615_v49  ;;  %v2041_v36 = vadd.f32 %v2009_v14, %v4844_v38  ;;  %v4992_v54 = vadd.f32 %v4485_v27, %v4896_v39 }
 0x228   : > { %v2043_v51 = vadd.f32 %v2011_v5, %v1717_v21  ;;  %v5426_v63 = vmov 0.0   ;;  %v4999_v38 = vadd.f32 %v4485_v27, %v4566_v42  ;;  %v2088_v55 = vadd.f32 %v2087_v37, %v4746_v45  ;;  %3339 = vmatpush3.bf16.msra.mxu1 %v3338_v16  ;;  %v2155_v21 = vld [vmem:[#allocation7 + $0x78] sm:$0xff] }
 0x229   : > { %v2102_v3 = vadd.f32 %v2101_v9, %v4981_v24  ;;  %v2042_v26 = vadd.f32 %v2010_v0, %v1716_v41  ;;  %3239 = vmatprep.mubr.msk.f32.mxu1 %vm3764_vm10, %v5426_v63  ;;  %v5002_v33 = vadd.f32 %v4485_v27, %v2041_v36  ;;  %v2113_v39 = vadd.f32 %v2112_v60, %v4754_v18  ;;  %v2154_v41 = vld [vmem:[#allocation7 + $0x70] sm:$0xff] }
 0x22a   : > { %v5008_v1 = vadd.f32 %v4485_v27, %v4568_v29  ;;  %v3341_v7 = vpack.c.bf16 %v2151_v35, %v2150_v34  ;;  %v5016_v42 = vadd.f32 %v4485_v27, %v4637_v52  ;;  %3340 = vmatprep.subr.bf16.mxu1 %v5421_v48  ;;  %v2089_v29 = vadd.f32 %v2088_v55, %v4750_v8 }
 0x22b   : > { %v2103_v61 = vadd.f32 %v2102_v3, %v4992_v54  ;;  %v5012_v40 = vadd.f32 %v4485_v27, %v2042_v26  ;;  %v2126_v31 = vadd.f32 %v2125_v59, %v5002_v33  ;;  %v2114_v4 = vadd.f32 %v2113_v39, %v4999_v38 }
 0x22c   : > { %v5024_v50 = vadd.f32 %v4485_v27, %v4662_v6  ;;  %v5027_v47 = vadd.f32 %v4485_v27, %v2043_v51  ;;  %v2090_v59 = vadd.f32 %v2089_v29, %v5016_v42  ;;  %3342 = vmatpush3.bf16.msra.mxu1 %v3341_v7  ;;  %v3344_v14 = vpack.c.bf16 %v2153_v43, %v2152_v10 }
 0x22d   : > { %v2104_v49 = vrot.slane %v2103_v61, 4  ;;  %v2127_v52 = vadd.f32 %v2126_v31, %v5012_v40  ;;  %v2115_v5 = vadd.f32 %v2114_v4, %v5008_v1  ;;  %v5034_v9 = vadd.f32 %v4485_v27, %v4920_v62  ;;  %3343 = vmatprep.subr.bf16.mxu1 %v5421_v48 }
 0x22e   : > { %v2091_v0 = vrot.slane %v2090_v59, 4  ;;  %v3347_v3 = vpack.c.bf16 %v2155_v21, %v2154_v41  ;;  %v2246_v41 = vld [vmem:[#allocation8 + $0x8] sm:$0xff] }
 0x22f   : > { %v2105_v16 = vadd.f32 %v2104_v49, %v2103_v61  ;;  %v2128_v6 = vadd.f32 %v2127_v52, %v5027_v47  ;;  %v2116_v36 = vadd.f32 %v2115_v5, %v5024_v50 }
 0x230   : > { %v2092_v35 = vadd.f32 %v2091_v0, %v2090_v59  ;;  %3345 = vmatpush3.bf16.msra.mxu1 %v3344_v14 }
 0x231   : > { %v2106_v34 = vrot.slane %v2105_v16, 2  ;;  %v2117_v37 = vrot.slane %v2116_v36, 4  ;;  %v2129_v60 = vadd.f32 %v2128_v6, %v5034_v9  ;;  %3346 = vmatprep.subr.bf16.mxu1 %v5421_v48  ;;  %v2245_v6 = vld [vmem:[#allocation8] sm:$0xff] }
 0x232   : > { %v2093_v27 = vrot.slane %v2092_v35, 2 }
 0x233   : > { %v2107_v26 = vadd.f32 %v2106_v34, %v2105_v16  ;;  %v2118_v62 = vadd.f32 %v2117_v37, %v2116_v36  ;;  %v2130_v51 = vrot.slane %v2129_v60, 4  ;;  %v3350_v37 = vpack.c.bf16 %v2246_v41, %v2245_v6  ;;  %v3494_v6 = vld [vmem:[#allocation10] sm:$0xff]  }
 0x234   : > { %v2094_v39 = vadd.f32 %v2093_v27, %v2092_v35  ;;  %3348 = vmatpush3.bf16.msra.mxu1 %v3347_v3  ;;  %v2248_v3 = vld [vmem:[#allocation8 + $0x18] sm:$0xff]  ;;  %3277 = vmatprep.subr.bf16.mxu0 %v3494_v6  ;;  %v3056_v41 = vld [vmem:[%s5427_s25] ss:$0 sm:$0xff]  ;;  %s3677_s25 = scalar_lea.vmem %s5243_s16, 4096 }
 0x235   : > { %v2108_v55 = vrot.slane %v2107_v26, 1  ;;  %v2119_v61 = vrot.slane %v2118_v62, 2  ;;  %v2131_v7 = vadd.f32 %v2130_v51, %v2129_v60  ;;  %3349 = vmatprep.subr.bf16.mxu1 %v5421_v48  ;;  %v2247_v60 = vld [vmem:[#allocation8 + $0x10] sm:$0xff]  ;;  %v2250_v51 = vld [vmem:[#allocation8 + $0x28] sm:$0xff]  ;;  %3278 = vmatpush3.bf16.msra.mxu0 %v3494_v6  ;;  %p3678_p8 = scmp.ne.s32.totalorder %s5243_s16, %s3677_s25 }
 0x236   : > { %v2095_v31 = vrot.slane %v2094_v39, 1  ;;  %v3353_v27 = vpack.c.bf16 %v2248_v3, %v2247_v60  ;;  %v3498_v60 = vld [vmem:[#allocation10 + $0x20] sm:$0xff]   ;;  %v3499_v3 = vld [vmem:[#allocation10 + $0x28] sm:$0xff]  }
 0x237   : > { %v2109_v10 = vadd.f32 %v2108_v55, %v2107_v26  ;;  %v2120_v43 = vadd.f32 %v2119_v61, %v2118_v62  ;;  %v2132_v29 = vrot.slane %v2131_v7, 2  ;;  %v2249_v62 = vld [vmem:[#allocation8 + $0x20] sm:$0xff]  ;;  %v2252_v61 = vld [vmem:[#allocation8 + $0x38] sm:$0xff]  ;;  %p3679_p10 = pnand %p3678_p8, %p3983_p6 }
 0x238   : > { %v2096_v4 = vadd.f32 %v2095_v31, %v2094_v39  ;;  %v3356_v55 = vpack.c.bf16 %v2250_v51, %v2249_v62  ;;  %v2251_v39 = vld [vmem:[#allocation8 + $0x30] sm:$0xff]  ;;  %v2253_v31 = vld [vmem:[#allocation8 + $0x40] sm:$0xff]  ;;  %v3765_v51 = vmov 1966171168  }
 0x239   : > { %v2121_v49 = vrot.slane %v2120_v43, 1  ;;  %v2133_v52 = vadd.f32 %v2132_v29, %v2131_v7  ;;  %v2137_v16 = vmul.f32 0.015625, %v2109_v10  ;;  %v3359_v7 = vpack.c.bf16 %v2252_v61, %v2251_v39  ;;  %v2254_v10 = vld [vmem:[#allocation8 + $0x48] sm:$0xff]  ;;  %v2256_v29 = vld [vmem:[#allocation8 + $0x58] sm:$0xff]  ;;  %v3057_v62 = vld [vmem:[%s5428_s6] ss:$0 sm:$0xff]  ;;  %p3680_p12 = pneg %p3679_p10 }
 0x23a   : > { %v2136_v14 = vmul.f32 0.015625, %v2096_v4  ;;  %s3683_s6 = scalar_lea.vmem %s3682_s11, 8192 }
 0x23b   : > { %v2122_v59 = vadd.f32 %v2121_v49, %v2120_v43  ;;  %v2134_v5 = vrot.slane %v2133_v52, 1  ;;  %v3362_v43 = vpack.c.bf16 %v2254_v10, %v2253_v31  ;;  %v2257_v49 = vld [vmem:[#allocation8 + $0x60] sm:$0xff]  ;;  %p3685_p7 = scmp.lt.s32.totalorder %s3683_s6, %s3677_s25 }
 0x23c   : > { %v2168_v36 = vsel %vm2167_vm11, %v2137_v16, %v2136_v14  ;;  %v2260_v14 = vld [vmem:[#allocation8 + $0x78] sm:$0xff] }
 0x23d   : > { %v2135_v21 = vadd.f32 %v2134_v5, %v2133_v52  ;;  %v2138_v0 = vmul.f32 0.015625, %v2122_v59  ;;  %v2258_v52 = vld [vmem:[#allocation8 + $0x68] sm:$0xff]  ;;  %v2259_v5 = vld [vmem:[#allocation8 + $0x70] sm:$0xff]  ;;  %p3686_p9 = por %p3685_p7, %p3684_p3 }
 0x23e   : > { %v3368_v59 = vpack.c.bf16 %v2258_v52, %v2257_v49  ;;  %v3371_v16 = vpack.c.bf16 %v2260_v14, %v2259_v5  ;;  %v5059_v52 = vsub.s32 0, %v4090_v57 }
 0x23f   : > { %v2139_v34 = vmul.f32 0.015625, %v2135_v21  ;;  %v2170_v35 = vsel %vm2169_vm12, %v2138_v0, %v2168_v36  ;;  %p3687_p13 = pnand %p3686_p9, %p3680_p12 }
 0x241   : > { %v2172_v26 = vsel %vm2171_vm13, %v2139_v34, %v2170_v35  ;;  %v3495_v35 = vld [vmem:[#allocation10 + $0x8] sm:$0xff]  }
 0x242   : > { %3240 = vmatmul.mubr.f32.vlgmr.msra.gmra.mrb[16].mxu1 %v2172_v26  ;;  %3279 = vmatprep.subr.bf16.mxu0 %v3495_v35  ;;  %v3500_v26 = vld [vmem:[#allocation10 + $0x30] sm:$0xff]  }
 0x243   : > { %3351 = vmatpush3.bf16.msra.mxu1 %v3350_v37  ;;  %3274 = vmatprep.mubr.msk.f32.mxu1 %vm3764_vm10, %v5426_v63  ;;  %v2255_v63 = vld [vmem:[#allocation8 + $0x50] sm:$0xff]  ;;  %v3497_v37 = vld [vmem:[#allocation10 + $0x18] sm:$0xff]  }
 0x244   : > { %3352 = vmatprep.subr.bf16.mxu1 %v5421_v48  ;;  %v3365_v4 = vpack.c.bf16 %v2256_v29, %v2255_v63  ;;  %3280 = vmatpush3.bf16.msra.mxu0 %v3495_v35 }
 0x247   : > { %3354 = vmatpush3.bf16.msra.mxu1 %v3353_v27  ;;  %v3501_v27 = vld [vmem:[#allocation10 + $0x38] sm:$0xff]  }
 0x248   : > { %3355 = vmatprep.subr.bf16.mxu1 %v5421_v48 }
 0x24b   : > { %3357 = vmatpush3.bf16.msra.mxu1 %v3356_v55  ;;  %v2344_v55 = vunpack.c.l.s4 %v3765_v51 }
 0x24c   : > { %3358 = vmatprep.subr.bf16.mxu1 %v5421_v48 }
 0x24d   : > { %v2345_v10 = vunpack.c.0.s8 %v2344_v55 }
 0x24f   : > { %3360 = vmatpush3.bf16.msra.mxu1 %v3359_v7  ;;  %v2348_v29 = vsub.s32 %v2345_v10, %v4090_v57 }
 0x250   : > { %3361 = vmatprep.subr.bf16.mxu1 %v5421_v48 }
 0x253   : > { %3363 = vmatpush3.bf16.msra.mxu1 %v3362_v43 }
 0x254   : > { %3364 = vmatprep.subr.bf16.mxu1 %v5421_v48 }
 0x257   : > { %3366 = vmatpush3.bf16.msra.mxu1 %v3365_v4 }
 0x258   : > { %3367 = vmatprep.subr.bf16.mxu1 %v5421_v48 }
 0x25b   : > { %3369 = vmatpush3.bf16.msra.mxu1 %v3368_v59 }
 0x25c   : > { %3370 = vmatprep.subr.bf16.mxu1 %v5421_v48  ;;  %v3496_v48 = vld [vmem:[#allocation10 + $0x10] sm:$0xff]  }
 0x25d   : > { %3281 = vmatprep.subr.bf16.mxu0 %v3496_v48 }
 0x25e   : > { %3282 = vmatpush3.bf16.msra.mxu0 %v3496_v48 }
 0x25f   : > { %3372 = vmatpush3.bf16.msra.mxu1 %v3371_v16  ;;  %3283 = vmatprep.subr.bf16.mxu0 %v3497_v37 }
 0x262   : > { %3284 = vmatpush3.bf16.msra.mxu0 %v3497_v37 }
 0x263   : > { %3285 = vmatprep.subr.bf16.mxu0 %v3498_v60 }
 0x266   : > { %3286 = vmatpush3.bf16.msra.mxu0 %v3498_v60 }
 0x267   : > { %3287 = vmatprep.subr.bf16.mxu0 %v3499_v3 }
 0x26a   : > { %3288 = vmatpush3.bf16.msra.mxu0 %v3499_v3 }
 0x26b   : > { %3289 = vmatprep.subr.bf16.mxu0 %v3500_v26 }
 0x26e   : > { %3290 = vmatpush3.bf16.msra.mxu0 %v3500_v26 }
 0x26f   : > { %3291 = vmatprep.subr.bf16.mxu0 %v3501_v27 }
 0x272   : > { %3292 = vmatpush3.bf16.msra.mxu0 %v3501_v27 }
 0x315   : > { %v2240_v21 = vpop.f32.mrb[16].mxu1 }
 0x316   : > { %v2241_v0 = vadd.f32 %v3056_v41, %v2240_v21  ;;  %v3241_v36 = vpop.f32.mrb[17].mxu1 }
 0x318   : > { %v2244_v34 = vmax.f32 %v2241_v0, 0.0 }
 0x31a   : > { %3275 = vmatmul.mubr.f32.vlgmr.msra.gmra.mrb[18].mxu1 %v2244_v34 }
 0x3ed   : > { %v2334_v39 = vpop.f32.mrb[18].mxu1 }
 0x3ee   : > { %v2335_v61 = vadd.f32 %v3057_v62, %v2334_v39  ;;  %v3276_v7 = vpop.f32.mrb[19].mxu1 }
 0x3f0   : > { %v2338_v31 = vadd.f32 3.0, %v2335_v61 }
 0x3f2   : > { %v2339_v43 = vmax.f32 %v2338_v31, 0.0 }
 0x3f4   : > { %v2340_v63 = vmin.f32 %v2339_v43, 6.0 }
 0x3f6   : > { %v2341_v4 = vmul.f32 0.16666667, %v2340_v63 }
 0x3f8   : > { %v2349_v49 = vrot.slane %v2341_v4, %v2348_v29 }
 0x3fa   : > { %v2350_v59 = vcombine.high %v2349_v49, %v2349_v49  ;;  %v2357_v5 = vrot.slane %v2349_v49, %v2348_v29 }
 0x3fc   : > { %v5061_v14 = vrot.slane %v2350_v59, %v2348_v29  ;;  %v2365_v16 = vcombine.high %v2357_v5, %v2357_v5  ;;  %v2370_v6 = vrot.slane %v2357_v5, %v5059_v52 }
 0x3fe   : > { %v5068_v21 = vrot.slane %v5061_v14, %v5059_v52  ;;  %v2387_v0 = vmul.f32 %v2370_v6, %v4934_v56  ;;  %v2388_v36 = vmul.f32 %v2370_v6, %v4503_v22  ;;  %v2389_v57 = vmul.f32 %v2370_v6, %v4510_v17 }
 0x3ff   : > { %v2390_v34 = vmul.f32 %v2370_v6, %v4559_v23  ;;  %v2391_v35 = vmul.f32 %v2370_v6, %v4736_v32  ;;  %v5076_v48 = vrot.slane %v2365_v16, %v5059_v52  ;;  %v2392_v60 = vmul.f32 %v2370_v6, %v4746_v45 }
 0x400   : > { %v2419_v37 = vadd.f32 3.0, %v2387_v0  ;;  %v2393_v3 = vmul.f32 %v2370_v6, %v4750_v8  ;;  %v2420_v26 = vadd.f32 3.0, %v2388_v36  ;;  %v2421_v27 = vadd.f32 3.0, %v2389_v57 }
 0x401   : > { %v2422_v62 = vadd.f32 3.0, %v2390_v34  ;;  %v2423_v56 = vadd.f32 3.0, %v2391_v35  ;;  %v2424_v22 = vadd.f32 3.0, %v2392_v60  ;;  %v2394_v17 = vmul.f32 %v2370_v6, %v5016_v42 }
 0x402   : > { %v2451_v51 = vmax.f32 %v2419_v37, 0.0  ;;  %v2425_v55 = vadd.f32 3.0, %v2393_v3  ;;  %v2452_v23 = vmax.f32 %v2420_v26, 0.0  ;;  %v2453_v39 = vmax.f32 %v2421_v27, 0.0 }
 0x403   : > { %v2454_v32 = vmax.f32 %v2422_v62, 0.0  ;;  %v2455_v61 = vmax.f32 %v2423_v56, 0.0  ;;  %v2456_v31 = vmax.f32 %v2424_v22, 0.0  ;;  %v2426_v10 = vadd.f32 3.0, %v2394_v17 }
 0x404   : > { %v2483_v7 = vmin.f32 %v2451_v51, 6.0  ;;  %v2457_v43 = vmax.f32 %v2425_v55, 0.0  ;;  %v2484_v45 = vmin.f32 %v2452_v23, 6.0  ;;  %v2485_v63 = vmin.f32 %v2453_v39, 6.0 }
 0x405   : > { %v2486_v8 = vmin.f32 %v2454_v32, 6.0  ;;  %v2487_v29 = vmin.f32 %v2455_v61, 6.0  ;;  %v2488_v49 = vmin.f32 %v2456_v31, 6.0  ;;  %v2458_v59 = vmax.f32 %v2426_v10, 0.0 }
 0x406   : > { %v2515_v4 = vmul.f32 %v2483_v7, %v2387_v0  ;;  %v2489_v5 = vmin.f32 %v2457_v43, 6.0  ;;  %v2516_v16 = vmul.f32 %v2484_v45, %v2388_v36  ;;  %v2517_v37 = vmul.f32 %v2485_v63, %v2389_v57 }
 0x407   : > { %v2518_v42 = vmul.f32 %v2486_v8, %v2390_v34  ;;  %v2519_v6 = vmul.f32 %v2487_v29, %v2391_v35  ;;  %v2520_v27 = vmul.f32 %v2488_v49, %v2392_v60  ;;  %v2490_v62 = vmin.f32 %v2458_v59, 6.0 }
 0x408   : > { %v2547_v26 = vmul.f32 0.16666667, %v2515_v4  ;;  %v2521_v56 = vmul.f32 %v2489_v5, %v2393_v3  ;;  %v2548_v51 = vmul.f32 0.16666667, %v2516_v16  ;;  %v2549_v22 = vmul.f32 0.16666667, %v2517_v37 }
 0x409   : > { %v2550_v41 = vmul.f32 0.16666667, %v2518_v42  ;;  %v2395_v55 = vmul.f32 %v5068_v21, %v4716_v30  ;;  %v2551_v23 = vmul.f32 0.16666667, %v2519_v6  ;;  %v2552_v39 = vmul.f32 0.16666667, %v2520_v27 }
 0x40a   : > { %v2522_v0 = vmul.f32 %v2490_v62, %v2394_v17  ;;  %v2553_v32 = vmul.f32 0.16666667, %v2521_v56  ;;  %v2579_v61 = vpack.c.bf16 %v2548_v51, %v2547_v26  ;;  %v2396_v36 = vmul.f32 %v5068_v21, %v4728_v11 }
 0x40b   : > { %v2580_v7 = vpack.c.bf16 %v2550_v41, %v2549_v22  ;;  %v2427_v57 = vadd.f32 3.0, %v2395_v55  ;;  %v2581_v34 = vpack.c.bf16 %v2552_v39, %v2551_v23  ;;  %v2397_v60 = vmul.f32 %v5068_v21, %v4757_v19 }
 0x40c   : > { %v2554_v35 = vmul.f32 0.16666667, %v2522_v0  ;;  %v2398_v3 = vmul.f32 %v5068_v21, %v4864_v25  ;;  %3293 = vmatprep.mubr.bf16.mxu0 %v2579_v61  ;;  %v2428_v30 = vadd.f32 3.0, %v2396_v36  ;;  %v2399_v17 = vmul.f32 %v5068_v21, %v4949_v2 }
 0x40d   : > { %v2459_v31 = vmax.f32 %v2427_v57, 0.0  ;;  %v2400_v41 = vmul.f32 %v5068_v21, %v4952_v13  ;;  %3294 = vmatmul.mubr.bf16.vlgmr.msra.gmra.mrb[16].mxu0 %v2580_v7  ;;  %v2429_v10 = vadd.f32 3.0, %v2397_v60  ;;  %v2401_v45 = vmul.f32 %v5068_v21, %v4981_v24 }
 0x40e   : > { %v2582_v11 = vpack.c.bf16 %v2554_v35, %v2553_v32  ;;  %v2430_v43 = vadd.f32 3.0, %v2398_v3  ;;  %3297 = vmatprep.mubr.bf16.mxu0 %v2581_v34  ;;  %v2460_v19 = vmax.f32 %v2428_v30, 0.0  ;;  %v2431_v25 = vadd.f32 3.0, %v2399_v17 }
 0x40f   : > { %v2491_v63 = vmin.f32 %v2459_v31, 6.0  ;;  %v2432_v8 = vadd.f32 3.0, %v2400_v41  ;;  %v2461_v29 = vmax.f32 %v2429_v10, 0.0  ;;  %v2402_v2 = vmul.f32 %v5068_v21, %v4992_v54 }
 0x410   : > { %v2462_v4 = vmax.f32 %v2430_v43, 0.0  ;;  %v2433_v49 = vadd.f32 3.0, %v2401_v45  ;;  %v2492_v59 = vmin.f32 %v2460_v19, 6.0  ;;  %v2463_v5 = vmax.f32 %v2431_v25, 0.0 }
 0x411   : > { %v2523_v13 = vmul.f32 %v2491_v63, %v2395_v55  ;;  %v2464_v16 = vmax.f32 %v2432_v8, 0.0  ;;  %v2493_v37 = vmin.f32 %v2461_v29, 6.0  ;;  %v2434_v6 = vadd.f32 3.0, %v2402_v2 }
 0x412   : > { %v2494_v42 = vmin.f32 %v2462_v4, 6.0  ;;  %v2465_v26 = vmax.f32 %v2433_v49, 0.0  ;;  %v2524_v24 = vmul.f32 %v2492_v59, %v2396_v36  ;;  %v2495_v62 = vmin.f32 %v2463_v5, 6.0 }
 0x413   : > { %v2555_v27 = vmul.f32 0.16666667, %v2523_v13  ;;  %v2496_v56 = vmin.f32 %v2464_v16, 6.0  ;;  %v2525_v51 = vmul.f32 %v2493_v37, %v2397_v60  ;;  %v2466_v23 = vmax.f32 %v2434_v6, 0.0 }
 0x414   : > { %v2526_v22 = vmul.f32 %v2494_v42, %v2398_v3  ;;  %v2497_v39 = vmin.f32 %v2465_v26, 6.0  ;;  %v2556_v0 = vmul.f32 0.16666667, %v2524_v24  ;;  %v2527_v32 = vmul.f32 %v2495_v62, %v2399_v17 }
 0x415   : > { %v2528_v54 = vmul.f32 %v2496_v56, %v2400_v41  ;;  %v2403_v21 = vmul.f32 %v5076_v48, %v4915_v53  ;;  %3298 = vmatmul.mubr.bf16.gmra.mrb[20].mxu0 %v2582_v11  ;;  %v2557_v55 = vmul.f32 0.16666667, %v2525_v51  ;;  %v2498_v7 = vmin.f32 %v2466_v23, 6.0 }
 0x416   : > { %v2558_v61 = vmul.f32 0.16666667, %v2526_v22  ;;  %v2529_v57 = vmul.f32 %v2497_v39, %v2401_v45  ;;  %v5429_v36 = vcombine.high %v5061_v14, %v5061_v14  ;;  %v2583_v35 = vpack.c.bf16 %v2556_v0, %v2555_v27 }
 0x417   : > { %v2404_v60 = vmul.f32 %v5076_v48, %v4546_v44  ;;  %v2559_v30 = vmul.f32 0.16666667, %v2527_v32  ;;  %v2560_v31 = vmul.f32 0.16666667, %v2528_v54  ;;  %v2435_v17 = vadd.f32 3.0, %v2403_v21 }
 0x418   : > { %v5103_v34 = vrot.slane %v5429_v36, %v5059_v52  ;;  %v2584_v3 = vpack.c.bf16 %v2558_v61, %v2557_v55  ;;  %3301 = vmatprep.mubr.bf16.mxu0 %v2583_v35  ;;  %v2530_v53 = vmul.f32 %v2498_v7, %v2402_v2  ;;  %v2405_v11 = vmul.f32 %v5076_v48, %v4550_v46 }
 0x419   : > { %v2436_v41 = vadd.f32 3.0, %v2404_v60  ;;  %v2406_v10 = vmul.f32 %v5076_v48, %v4563_v15  ;;  %v2561_v14 = vmul.f32 0.16666667, %v2529_v57  ;;  %v2467_v52 = vmax.f32 %v2435_v17, 0.0 }
 0x41a   : > { %v2407_v43 = vmul.f32 %v5076_v48, %v4754_v18  ;;  %v2408_v44 = vmul.f32 %v5076_v48, %v4999_v38  ;;  %v2437_v19 = vadd.f32 3.0, %v2405_v11  ;;  %v2409_v25 = vmul.f32 %v5076_v48, %v5008_v1 }
 0x41b   : > { %v2468_v45 = vmax.f32 %v2436_v41, 0.0  ;;  %v2438_v63 = vadd.f32 3.0, %v2406_v10  ;;  %v2585_v8 = vpack.c.bf16 %v2560_v31, %v2559_v30  ;;  %v2499_v29 = vmin.f32 %v2467_v52, 6.0 }
 0x41c   : > { %v2439_v46 = vadd.f32 3.0, %v2407_v43  ;;  %v2440_v4 = vadd.f32 3.0, %v2408_v44  ;;  %v2469_v15 = vmax.f32 %v2437_v19, 0.0  ;;  %v2410_v59 = vmul.f32 %v5076_v48, %v5024_v50 }
 0x41d   : > { %v2500_v2 = vmin.f32 %v2468_v45, 6.0  ;;  %v2470_v49 = vmax.f32 %v2438_v63, 0.0  ;;  %3302 = vmatmul.mubr.bf16.gmra.mrb[24].mxu0 %v2584_v3  ;;  %v2531_v18 = vmul.f32 %v2499_v29, %v2403_v21  ;;  %v2441_v5 = vadd.f32 3.0, %v2409_v25 }
 0x41e   : > { %v2471_v13 = vmax.f32 %v2439_v46, 0.0  ;;  %v2472_v38 = vmax.f32 %v2440_v4, 0.0  ;;  %3305 = vmatprep.mubr.bf16.mxu0 %v2585_v8  ;;  %v2501_v37 = vmin.f32 %v2469_v15, 6.0  ;;  %v2442_v1 = vadd.f32 3.0, %v2410_v59 }
 0x41f   : > { %v2532_v16 = vmul.f32 %v2500_v2, %v2404_v60  ;;  %v2502_v42 = vmin.f32 %v2470_v49, 6.0  ;;  %v2562_v6 = vmul.f32 0.16666667, %v2530_v53  ;;  %v2473_v27 = vmax.f32 %v2441_v5, 0.0 }
 0x420   : > { %v2503_v26 = vmin.f32 %v2471_v13, 6.0  ;;  %v2504_v24 = vmin.f32 %v2472_v38, 6.0  ;;  %v2563_v62 = vmul.f32 0.16666667, %v2531_v18  ;;  %v2533_v51 = vmul.f32 %v2501_v37, %v2405_v11 }
 0x421   : > { %v2564_v56 = vmul.f32 0.16666667, %v2532_v16  ;;  %v2534_v22 = vmul.f32 %v2502_v42, %v2406_v10  ;;  %v2474_v23 = vmax.f32 %v2442_v1, 0.0  ;;  %v2411_v50 = vmul.f32 %v5103_v34, %v4760_v12 }
 0x422   : > { %v2535_v48 = vmul.f32 %v2503_v26, %v2407_v43  ;;  %v2536_v39 = vmul.f32 %v2504_v24, %v2408_v44  ;;  %v2586_v0 = vpack.c.bf16 %v2562_v6, %v2561_v14  ;;  %v2505_v32 = vmin.f32 %v2473_v27, 6.0 }
 0x423   : > { %v2412_v54 = vmul.f32 %v5103_v34, %v4765_v58  ;;  %v2587_v21 = vpack.c.bf16 %v2564_v56, %v2563_v62  ;;  %v2565_v55 = vmul.f32 0.16666667, %v2533_v51  ;;  %v2443_v61 = vadd.f32 3.0, %v2411_v50 }
 0x424   : > { %v2413_v7 = vmul.f32 %v5103_v34, %v4778_v20  ;;  %v2566_v57 = vmul.f32 0.16666667, %v2534_v22  ;;  %v2506_v36 = vmin.f32 %v2474_v23, 6.0  ;;  %v2414_v12 = vmul.f32 %v5103_v34, %v4889_v28 }
 0x425   : > { %3306 = vmatmul.mubr.bf16.gmra.mrb[28].mxu0 %v2586_v0  ;;  %v2444_v35 = vadd.f32 3.0, %v2412_v54  ;;  %v2567_v60 = vmul.f32 0.16666667, %v2535_v48  ;;  %v2568_v3 = vmul.f32 0.16666667, %v2536_v39  ;;  %v2475_v30 = vmax.f32 %v2443_v61, 0.0 }
 0x426   : > { %3309 = vmatprep.mubr.bf16.mxu0 %v2587_v21  ;;  %v2415_v58 = vmul.f32 %v5103_v34, %v5002_v33  ;;  %v2445_v17 = vadd.f32 3.0, %v2413_v7  ;;  %v2446_v53 = vadd.f32 3.0, %v2414_v12  ;;  %v2416_v20 = vmul.f32 %v5103_v34, %v5012_v40 }
 0x427   : > { %v2476_v31 = vmax.f32 %v2444_v35, 0.0  ;;  %v2507_v41 = vmin.f32 %v2475_v30, 6.0  ;;  %v2588_v52 = vpack.c.bf16 %v2566_v57, %v2565_v55  ;;  %v2589_v43 = vpack.c.bf16 %v2568_v3, %v2567_v60  ;;  %v3504_v3 = vld [vmem:[%s4044_s12] sm:$0xff] }
 0x428   : > { %v2447_v11 = vadd.f32 3.0, %v2415_v58  ;;  %v2448_v14 = vadd.f32 3.0, %v2416_v20  ;;  %v2537_v28 = vmul.f32 %v2505_v32, %v2409_v25  ;;  %v2538_v44 = vmul.f32 %v2506_v36, %v2410_v59  ;;  %v3503_v36 = vld [vmem:[%s4044_s12 + $0x10] sm:$0xff] }
 0x429   : > { %v2508_v10 = vmin.f32 %v2476_v31, 6.0  ;;  %v2477_v45 = vmax.f32 %v2445_v17, 0.0  ;;  %v2478_v19 = vmax.f32 %v2446_v53, 0.0  ;;  %v2417_v63 = vmul.f32 %v5103_v34, %v5027_v47  ;;  %v3505_v31 = vld [vmem:[%s4044_s12 + $0x18] sm:$0xff]  ;;  %v3506_v53 = vld [vmem:[%s4044_s12 + $0x8] sm:$0xff] }
 0x42a   : > { %v2418_v33 = vmul.f32 %v5103_v34, %v5034_v9  ;;  %v2539_v8 = vmul.f32 %v2507_v41, %v2411_v50  ;;  %v2479_v46 = vmax.f32 %v2447_v11, 0.0  ;;  %v2480_v40 = vmax.f32 %v2448_v14, 0.0 }
 0x42b   : > { %v2540_v29 = vmul.f32 %v2508_v10, %v2412_v54  ;;  %v2569_v4 = vmul.f32 0.16666667, %v2537_v28  ;;  %v2570_v2 = vmul.f32 0.16666667, %v2538_v44  ;;  %v2509_v15 = vmin.f32 %v2477_v45, 6.0 }
 0x42c   : > { %v2510_v49 = vmin.f32 %v2478_v19, 6.0  ;;  %v2449_v25 = vadd.f32 3.0, %v2417_v63  ;;  %v2450_v59 = vadd.f32 3.0, %v2418_v33  ;;  %v2571_v18 = vmul.f32 0.16666667, %v2539_v8  ;;  %v3508_v19 = vld [vmem:[%s4044_s12 + $0x20] sm:$0xff] }
 0x42d   : > { %3310 = vmatmul.mubr.bf16.gmra.mrb[32].mxu0 %v2588_v52  ;;  %v2572_v13 = vmul.f32 0.16666667, %v2540_v29  ;;  %v2511_v38 = vmin.f32 %v2479_v46, 6.0  ;;  %v2512_v5 = vmin.f32 %v2480_v40, 6.0  ;;  %v2590_v47 = vpack.c.bf16 %v2570_v2, %v2569_v4  ;;  %v5138_v54 = vld [vmem:[%s5430_s27] ss:$0 sm:$0xff] }
 0x42e   : > { %3313 = vmatprep.mubr.bf16.mxu0 %v2589_v43  ;;  %v2541_v16 = vmul.f32 %v2509_v15, %v2413_v7  ;;  %v2542_v37 = vmul.f32 %v2510_v49, %v2414_v12  ;;  %v2481_v9 = vmax.f32 %v2449_v25, 0.0  ;;  %v2482_v34 = vmax.f32 %v2450_v59, 0.0  ;;  %v3507_v43 = vld [vmem:[%s4044_s12 + $0x30] sm:$0xff]  ;;  %v3509_v8 = vld [vmem:[%s4044_s12 + $0x38] sm:$0xff]  ;;  %v3510_v46 = vld [vmem:[%s4044_s12 + $0x28] sm:$0xff] }
 0x42f   : > { %v2591_v42 = vpack.c.bf16 %v2572_v13, %v2571_v18  ;;  %v2543_v1 = vmul.f32 %v2511_v38, %v2415_v58  ;;  %v2544_v6 = vmul.f32 %v2512_v5, %v2416_v20  ;;  %v3511_v59 = vld [vmem:[%s4044_s12 + $0x50] sm:$0xff]  ;;  %v3512_v5 = vld [vmem:[%s4044_s12 + $0x40] sm:$0xff] }
 0x430   : > { %v2573_v26 = vmul.f32 0.16666667, %v2541_v16  ;;  %v2574_v24 = vmul.f32 0.16666667, %v2542_v37  ;;  %v2513_v27 = vmin.f32 %v2481_v9, 6.0  ;;  %v2514_v62 = vmin.f32 %v2482_v34, 6.0 }
 0x431   : > { %v2575_v56 = vmul.f32 0.16666667, %v2543_v1  ;;  %v2576_v51 = vmul.f32 0.16666667, %v2544_v6  ;;  %v3513_v37 = vld [vmem:[%s4044_s12 + $0x58] sm:$0xff]  ;;  %v3514_v34 = vld [vmem:[%s4044_s12 + $0x48] sm:$0xff] }
 0x432   : > { %v2592_v22 = vpack.c.bf16 %v2574_v24, %v2573_v26  ;;  %v2545_v23 = vmul.f32 %v2513_v27, %v2417_v63  ;;  %v2546_v50 = vmul.f32 %v2514_v62, %v2418_v33  ;;  %v3515_v62 = vld [vmem:[%s4044_s12 + $0x70] sm:$0xff] }
 0x433   : > { %v2593_v48 = vpack.c.bf16 %v2576_v51, %v2575_v56 }
 0x434   : > { %v2577_v39 = vmul.f32 0.16666667, %v2545_v23  ;;  %v2578_v0 = vmul.f32 0.16666667, %v2546_v50  ;;  %v3516_v23 = vld [vmem:[%s4044_s12 + $0x60] sm:$0xff] }
 0x435   : > { %3314 = vmatmul.mubr.bf16.gmra.mrb[36].mxu0 %v2590_v47 }
 0x436   : > { %3317 = vmatprep.mubr.bf16.mxu0 %v2591_v42  ;;  %v2594_v32 = vpack.c.bf16 %v2578_v0, %v2577_v39  ;;  %v3517_v39 = vld [vmem:[%s4044_s12 + $0x78] sm:$0xff] }
 0x43d   : > { %3318 = vmatmul.mubr.bf16.gmra.mrb[40].mxu0 %v2592_v22 }
 0x43e   : > { %3321 = vmatprep.mubr.bf16.mxu0 %v2593_v48 }
 0x445   : > { %3322 = vmatmul.mubr.bf16.gmra.mrb[44].mxu0 %v2594_v32  ;;  %v3518_v32 = vld [vmem:[%s4044_s12 + $0x68] sm:$0xff] }
 0x4e0   : > { %v3295_v21 = vpop.f32.mrb[16].mxu0 }
 0x4e1   : > { %v2709_v55 = vadd.f32 %v3295_v21, %v5138_v54  ;;  %v2700_v61 = vpop.f32.mrb[17].mxu0 }
 0x4e2   : > { %v2701_v7 = vadd.f32 %v5138_v54, %v2700_v61  ;;  %v3296_v57 = vpop.f32.mrb[18].mxu0 }
 0x4e3   : > { %v2829_v35 = vadd.f32 %v3503_v36, %v2709_v55  ;;  %v2712_v12 = vadd.f32 %v3296_v57, %v5138_v54  ;;  %v2703_v60 = vpop.f32.mrb[19].mxu0 }
 0x4e4   : > { %v2827_v30 = vadd.f32 %v3504_v3, %v2701_v7  ;;  %v2704_v58 = vadd.f32 %v5138_v54, %v2703_v60 }
 0x4e5   : > { %2861 = vst [vmem:[%s5148_s26 + $0x10] sm:$0xff] %v2829_v35  ;;  %v2830_v17 = vadd.f32 %v3505_v31, %v2712_v12  ;;  %v3519_v35 = vld [vmem:[%s4044_s12 + $0x90] sm:$0xff] }
 0x4e6   : > { %2859 = vst [vmem:[%s5148_s26] sm:$0xff] %v2827_v30  ;;  %v2828_v20 = vadd.f32 %v3506_v53, %v2704_v58  ;;  %v3520_v30 = vld [vmem:[%s4044_s12 + $0x80] sm:$0xff] }
 0x4e7   : > { %2862 = vst [vmem:[%s5148_s26 + $0x18] sm:$0xff] %v2830_v17  ;;  %v3521_v17 = vld [vmem:[%s4044_s12 + $0x98] sm:$0xff] }
 0x4e8   : > { %2860 = vst [vmem:[%s5148_s26 + $0x8] sm:$0xff] %v2828_v20  ;;  %v3299_v41 = vpop.f32.mrb[20].mxu0  ;;  %v3522_v20 = vld [vmem:[%s4044_s12 + $0x88] sm:$0xff] }
 0x4e9   : > { %v2725_v11 = vadd.f32 %v3299_v41, %v5138_v54  ;;  %v2716_v10 = vpop.f32.mrb[21].mxu0 }
 0x4ea   : > { %v2717_v14 = vadd.f32 %v5138_v54, %v2716_v10  ;;  %v3300_v52 = vpop.f32.mrb[22].mxu0 }
 0x4eb   : > { %v2833_v28 = vadd.f32 %v3507_v43, %v2725_v11  ;;  %v2728_v44 = vadd.f32 %v3300_v52, %v5138_v54  ;;  %v2719_v45 = vpop.f32.mrb[23].mxu0 }
 0x4ec   : > { %v2831_v63 = vadd.f32 %v3508_v19, %v2717_v14  ;;  %v2720_v33 = vadd.f32 %v5138_v54, %v2719_v45 }
 0x4ed   : > { %2865 = vst [vmem:[%s5148_s26 + $0x30] sm:$0xff] %v2833_v28  ;;  %v2834_v29 = vadd.f32 %v3509_v8, %v2728_v44  ;;  %v3523_v28 = vld [vmem:[%s4044_s12 + $0xb0] sm:$0xff] }
 0x4ee   : > { %2863 = vst [vmem:[%s5148_s26 + $0x20] sm:$0xff] %v2831_v63  ;;  %v2832_v40 = vadd.f32 %v3510_v46, %v2720_v33  ;;  %v3524_v63 = vld [vmem:[%s4044_s12 + $0xa0] sm:$0xff] }
 0x4ef   : > { %2866 = vst [vmem:[%s5148_s26 + $0x38] sm:$0xff] %v2834_v29  ;;  %v3525_v29 = vld [vmem:[%s4044_s12 + $0xb8] sm:$0xff] }
 0x4f0   : > { %2864 = vst [vmem:[%s5148_s26 + $0x28] sm:$0xff] %v2832_v40  ;;  %v3303_v4 = vpop.f32.mrb[24].mxu0  ;;  %v3526_v40 = vld [vmem:[%s4044_s12 + $0xa8] sm:$0xff] }
 0x4f1   : > { %v2741_v2 = vadd.f32 %v3303_v4, %v5138_v54  ;;  %v2732_v15 = vpop.f32.mrb[25].mxu0 }
 0x4f2   : > { %v2733_v49 = vadd.f32 %v5138_v54, %v2732_v15  ;;  %v3304_v25 = vpop.f32.mrb[26].mxu0 }
 0x4f3   : > { %v2837_v18 = vadd.f32 %v3511_v59, %v2741_v2  ;;  %v2744_v13 = vadd.f32 %v3304_v25, %v5138_v54  ;;  %v2735_v38 = vpop.f32.mrb[27].mxu0 }
 0x4f4   : > { %v2835_v47 = vadd.f32 %v3512_v5, %v2733_v49  ;;  %v2736_v16 = vadd.f32 %v5138_v54, %v2735_v38 }
 0x4f5   : > { %2869 = vst [vmem:[%s5148_s26 + $0x50] sm:$0xff] %v2837_v18  ;;  %v2838_v9 = vadd.f32 %v3513_v37, %v2744_v13  ;;  %v3527_v18 = vld [vmem:[%s4044_s12 + $0xd0] sm:$0xff] }
 0x4f6   : > { %2867 = vst [vmem:[%s5148_s26 + $0x40] sm:$0xff] %v2835_v47  ;;  %v2836_v42 = vadd.f32 %v3514_v34, %v2736_v16  ;;  %v3528_v47 = vld [vmem:[%s4044_s12 + $0xc0] sm:$0xff] }
 0x4f7   : > { %2870 = vst [vmem:[%s5148_s26 + $0x58] sm:$0xff] %v2838_v9  ;;  %v3529_v9 = vld [vmem:[%s4044_s12 + $0xd8] sm:$0xff] }
 0x4f8   : > { %2868 = vst [vmem:[%s5148_s26 + $0x48] sm:$0xff] %v2836_v42  ;;  %v3307_v1 = vpop.f32.mrb[28].mxu0  ;;  %v3530_v42 = vld [vmem:[%s4044_s12 + $0xc8] sm:$0xff] }
 0x4f9   : > { %v2757_v6 = vadd.f32 %v3307_v1, %v5138_v54  ;;  %v2748_v26 = vpop.f32.mrb[29].mxu0 }
 0x4fa   : > { %v2749_v24 = vadd.f32 %v5138_v54, %v2748_v26  ;;  %v3308_v27 = vpop.f32.mrb[30].mxu0 }
 0x4fb   : > { %v2841_v56 = vadd.f32 %v3515_v62, %v2757_v6  ;;  %v2760_v51 = vadd.f32 %v3308_v27, %v5138_v54  ;;  %v2751_v22 = vpop.f32.mrb[31].mxu0 }
 0x4fc   : > { %v2839_v50 = vadd.f32 %v3516_v23, %v2749_v24  ;;  %v2752_v48 = vadd.f32 %v5138_v54, %v2751_v22 }
 0x4fd   : > { %2873 = vst [vmem:[%s5148_s26 + $0x70] sm:$0xff] %v2841_v56  ;;  %v2842_v0 = vadd.f32 %v3517_v39, %v2760_v51  ;;  %v3531_v56 = vld [vmem:[%s4044_s12 + $0xf0] sm:$0xff] }
 0x4fe   : > { %2871 = vst [vmem:[%s5148_s26 + $0x60] sm:$0xff] %v2839_v50  ;;  %v2840_v21 = vadd.f32 %v3518_v32, %v2752_v48  ;;  %v3532_v50 = vld [vmem:[%s4044_s12 + $0xe0] sm:$0xff] }
 0x4ff   : > { %2874 = vst [vmem:[%s5148_s26 + $0x78] sm:$0xff] %v2842_v0  ;;  %v3533_v0 = vld [vmem:[%s4044_s12 + $0xf8] sm:$0xff] }
 0x500   : > { %2872 = vst [vmem:[%s5148_s26 + $0x68] sm:$0xff] %v2840_v21  ;;  %v3311_v55 = vpop.f32.mrb[32].mxu0  ;;  %v3534_v21 = vld [vmem:[%s4044_s12 + $0xe8] sm:$0xff] }
 0x501   : > { %v2773_v61 = vadd.f32 %v3311_v55, %v5138_v54  ;;  %v2764_v7 = vpop.f32.mrb[33].mxu0 }
 0x502   : > { %v2765_v57 = vadd.f32 %v5138_v54, %v2764_v7  ;;  %v3312_v36 = vpop.f32.mrb[34].mxu0 }
 0x503   : > { %v2845_v12 = vadd.f32 %v3519_v35, %v2773_v61  ;;  %v2776_v60 = vadd.f32 %v3312_v36, %v5138_v54  ;;  %v2767_v3 = vpop.f32.mrb[35].mxu0 }
 0x504   : > { %v2843_v58 = vadd.f32 %v3520_v30, %v2765_v57  ;;  %v2768_v31 = vadd.f32 %v5138_v54, %v2767_v3 }
 0x505   : > { %2877 = vst [vmem:[%s5148_s26 + $0x90] sm:$0xff] %v2845_v12  ;;  %v2846_v53 = vadd.f32 %v3521_v17, %v2776_v60 }
 0x506   : > { %2875 = vst [vmem:[%s5148_s26 + $0x80] sm:$0xff] %v2843_v58  ;;  %v2844_v41 = vadd.f32 %v3522_v20, %v2768_v31 }
 0x507   : > { %2878 = vst [vmem:[%s5148_s26 + $0x98] sm:$0xff] %v2846_v53 }
 0x508   : > { %2876 = vst [vmem:[%s5148_s26 + $0x88] sm:$0xff] %v2844_v41  ;;  %v3315_v11 = vpop.f32.mrb[36].mxu0 }
 0x509   : > { %v2789_v10 = vadd.f32 %v3315_v11, %v5138_v54  ;;  %v2780_v14 = vpop.f32.mrb[37].mxu0 }
 0x50a   : > { %v2781_v52 = vadd.f32 %v5138_v54, %v2780_v14  ;;  %v3316_v43 = vpop.f32.mrb[38].mxu0 }
 0x50b   : > { %v2849_v44 = vadd.f32 %v3523_v28, %v2789_v10  ;;  %v2792_v45 = vadd.f32 %v3316_v43, %v5138_v54  ;;  %v2783_v19 = vpop.f32.mrb[39].mxu0 }
 0x50c   : > { %v2847_v33 = vadd.f32 %v3524_v63, %v2781_v52  ;;  %v2784_v8 = vadd.f32 %v5138_v54, %v2783_v19 }
 0x50d   : > { %2881 = vst [vmem:[%s5148_s26 + $0xb0] sm:$0xff] %v2849_v44  ;;  %v2850_v46 = vadd.f32 %v3525_v29, %v2792_v45 }
 0x50e   : > { %2879 = vst [vmem:[%s5148_s26 + $0xa0] sm:$0xff] %v2847_v33  ;;  %v2848_v4 = vadd.f32 %v3526_v40, %v2784_v8 }
 0x50f   : > { %2882 = vst [vmem:[%s5148_s26 + $0xb8] sm:$0xff] %v2850_v46 }
 0x510   : > { %2880 = vst [vmem:[%s5148_s26 + $0xa8] sm:$0xff] %v2848_v4  ;;  %v3319_v2 = vpop.f32.mrb[40].mxu0 }
 0x511   : > { %v2805_v15 = vadd.f32 %v3319_v2, %v5138_v54  ;;  %v2796_v49 = vpop.f32.mrb[41].mxu0 }
 0x512   : > { %v2797_v25 = vadd.f32 %v5138_v54, %v2796_v49  ;;  %v3320_v59 = vpop.f32.mrb[42].mxu0 }
 0x513   : > { %v2853_v13 = vadd.f32 %v3527_v18, %v2805_v15  ;;  %v2808_v38 = vadd.f32 %v3320_v59, %v5138_v54  ;;  %v2799_v5 = vpop.f32.mrb[43].mxu0 }
 0x514   : > { %v2851_v16 = vadd.f32 %v3528_v47, %v2797_v25  ;;  %v2800_v37 = vadd.f32 %v5138_v54, %v2799_v5 }
 0x515   : > { %2885 = vst [vmem:[%s5148_s26 + $0xd0] sm:$0xff] %v2853_v13  ;;  %v2854_v34 = vadd.f32 %v3529_v9, %v2808_v38 }
 0x516   : > { %2883 = vst [vmem:[%s5148_s26 + $0xc0] sm:$0xff] %v2851_v16  ;;  %v2852_v1 = vadd.f32 %v3530_v42, %v2800_v37 }
 0x517   : > { %2886 = vst [vmem:[%s5148_s26 + $0xd8] sm:$0xff] %v2854_v34 }
 0x518   : > { %2884 = vst [vmem:[%s5148_s26 + $0xc8] sm:$0xff] %v2852_v1  ;;  %v3323_v6 = vpop.f32.mrb[44].mxu0 }
 0x519   : > { %v2821_v26 = vadd.f32 %v3323_v6, %v5138_v54  ;;  %v2812_v24 = vpop.f32.mrb[45].mxu0 }
 0x51a   : > { %v2813_v27 = vadd.f32 %v5138_v54, %v2812_v24  ;;  %v3324_v62 = vpop.f32.mrb[46].mxu0 }
 0x51b   : > { %v2857_v51 = vadd.f32 %v3531_v56, %v2821_v26  ;;  %v2824_v22 = vadd.f32 %v3324_v62, %v5138_v54  ;;  %v2815_v23 = vpop.f32.mrb[47].mxu0 }
 0x51c   : > { %v2855_v48 = vadd.f32 %v3532_v50, %v2813_v27  ;;  %v2816_v39 = vadd.f32 %v5138_v54, %v2815_v23 }
 0x51d   : > { %2889 = vst [vmem:[%s5148_s26 + $0xf0] sm:$0xff] %v2857_v51  ;;  %v2858_v32 = vadd.f32 %v3533_v0, %v2824_v22 }
 0x51e   : > { %2887 = vst [vmem:[%s5148_s26 + $0xe0] sm:$0xff] %v2855_v48  ;;  %v2856_v55 = vadd.f32 %v3534_v21, %v2816_v39 }
 0x51f   : > { %2890 = vst [vmem:[%s5148_s26 + $0xf8] sm:$0xff] %v2858_v32 }
 0x520   : > { %2888 = vst [vmem:[%s5148_s26 + $0xe8] sm:$0xff] %v2856_v55 }
 0x521   : > { %3690 = shalt.err (!%p3687_p13)
}
 0x522   : > { %s3691_s12 = scalar_lea.hbm %s5241_s24, 4096  ;;  %s3695_s27 = scalar_lea.hbm %s5431_s21, 8192 }
 0x523   : > { %p3692_p0 = scmp.ne.s32.totalorder %s5241_s24, %s3691_s12  ;;  %p3696_p1 = scmp.lt.u32.totalorder %s5241_s24, %s5431_s21 }
 0x524   : > { %p3697_p2 = scmp.lt.u32.totalorder %s3695_s27, %s3691_s12  ;;  %p3699_p8 = scmp.lt.u32.totalorder %s3691_s12, %s5241_s24 }
 0x525   : > { %p3693_p5 = pnand %p3692_p0, %p3983_p6 }
 0x526   : > { %p3698_p4 = por %p3697_p2, %p3696_p1 }
 0x527   : > { %p3694_p11 = pneg %p3693_p5 }
 0x528   : > { %p3700_p10 = por %p3699_p8, %p3698_p4 }
 0x52a   : > { %p3701_p12 = pnand %p3700_p10, %p3694_p11 }
 0x52c   : > { %3704 = shalt.err (!%p3701_p12)
}
 0x52d   : > { %s3767_s17 = smov 128   ;;  %s3768_s29 = smov 8  }
 0x52e   : > { %3407 = dma.vmem_to_hbm [thread:$0]  (%p3983_p6), %s5243_s16, 4096, %s5241_s24, %s2892_s23, %s3767_s17, %s3767_s17, %s3768_s29  }
 0x52f PF: > { %s5432_s25 = sld [smem:[#allocation16_spill]]  ;;  %s5433_s10 = sld [smem:[#allocation17_spill]] }
 0x530   : > { %p5435_p7 = scmp.ge.s32.totalorder %s3751_s20, 2 }
 0x535   : > { %s2921_s11 = sand.u32 1, %s5432_s25   ;;  %p5434_p3 = scmp.ne.s32.totalorder %s5433_s10, 0 }
 0x536   : > { %s2922_s6 = scalar_lea.sflag [#allocation4], %s2921_s11 }
 0x537   : > { %p3427_p9 = pnand %p5435_p7, %p5434_p3 }
 0x539   : > { %3734 = dma.done.wait (!%p3427_p9), %s2922_s6, 4096  }
 0x53a   : > { %3736 = vsyncadd (!%p3427_p9), %s2922_s6, 4294963200  ;;  %p26_p13 = scmp.ge.s32.totalorder %s3973_s22, 4   ;;  %s5436_s17 = smov %s3743_s18 }
 0x53b   : > { %s5437_s18 = smov %s3747_s19  ;;  %s5438_s19 = smov %s3989_s15 }
 0x53c   : > { %s5439_s20 = smov %s3973_s22  ;;  %28 = sbr.rel (!%p26_p13) target bundleno = 12 (0xc), region = 125 }
 0x543   :  { %2927 = vsyncpa [#allocation3], 1 }
 0x544   :  { %2929 = vsyncpa [#allocation3 + $0x1], 1 }
 0x545   :  { %2930 = vsyncpa [#allocation6], 1 }
 0x546   :  { %2931 = vsyncpa [#allocation9], 1 }
 0x547   :  { %2932 = vsyncpa [#allocation4], 1 }
 0x548   :  { %2934 = vsyncpa [#allocation4 + $0x1], 1 }

</bundles_post_ra>
